<compile_context>
chip_gen: v7x
topology: tpu7x:2x2x1
jax: 0.10.0
libtpu: 0.0.40
codegen_flags: <defaults>
</compile_context>

<pallas_src>
import functools

import numpy as np
import jax
import jax.numpy as jnp
from jax import lax
from jax.experimental import pallas as pl
from jax.experimental.pallas import tpu as pltpu


# ---------------------------------------------------------------------------
# constant-operator construction (glue, built once; not per-forward compute)
# ---------------------------------------------------------------------------
def _smoothing_matrix(n, d, k_c):
    """Real matrix S s.t. S @ v == real(ifft(gaussian(k) * fft(v))) along one axis."""
    freqs = np.fft.fftfreq(n, d=d) * 2.0 * np.pi
    g = np.exp(-(freqs ** 2) / (k_c ** 2))
    jk = np.outer(np.arange(n), np.arange(n))
    F = np.exp(-2j * np.pi * jk / n)            # forward DFT
    Finv = np.exp(2j * np.pi * jk / n) / n      # inverse DFT
    S = (Finv * g[None, :]) @ F                 # Finv @ diag(g) @ F  (real)
    return np.real(S).astype(np.float32)


# ---------------------------------------------------------------------------
# Pallas kernel: clip -> smoothen -> fused split-step BPM -> fused projection
# ---------------------------------------------------------------------------
def tdwg_kernel(mod_ref,                 # [G, Nz, Nx]   designs of this block
                sz_ref, sxT_ref,         # [Nz,Nz], [Nx,Nx]  smoothen operators
                bg_ref,                  # [Nz, Nx]      background delta-n
                e0_ref,                  # [M, 2*Nx]     [re|im] beams, pr folded in
                p2_ref,                  # [2Nx, 2Nx]    real-embedded propagator (bf16)
                moT2_ref,                # [2Nx, 2*n_modes] fused projection (bf16)
                u_ref,                   # [M, 2*n_modes] output [a_re | a_im]
                cc_scr, ss_scr,          # [Nz, M, 2Nx]  phase tables (pre-broadcast)
                *, nz, nx, n_modes, g_designs, k0_dz, delta_n_val):
    f32 = jnp.float32
    bf16 = jnp.bfloat16

    # ---- prologue (off the serial critical path), per stacked design --------
    # mod.clip(0,1); smoothen(mod) == Sz @ mod @ SxT  (separable real equivalent
    # of fft2 -> gaussian -> ifft2.real).  cos/sin of the per-z phase computed
    # once at full vreg density (EUP) and pre-broadcast to all rows of the
    # design's block so the z loop has no per-step sublane broadcast.
    for d in range(g_designs):
        mod = jnp.clip(mod_ref[d], 0.0, 1.0)                        # [Nz, Nx]
        tmp = jnp.dot(sz_ref[...], mod, preferred_element_type=f32)
        mod_f = jnp.dot(tmp, sxT_ref[...], preferred_element_type=f32)
        phi = k0_dz * (bg_ref[...] + delta_n_val * mod_f)           # [Nz, Nx]
        c = jnp.cos(phi)
        s = jnp.sin(phi)
        cc = jnp.concatenate([c, c], axis=-1)[:, None, :]           # [Nz,1,2Nx]
        ss = jnp.concatenate([-s, s], axis=-1)[:, None, :]
        rows = pl.ds(d * n_modes, n_modes)
        cc_scr[:, rows, :] = jnp.broadcast_to(cc, (nz, n_modes, 2 * nx))
        ss_scr[:, rows, :] = jnp.broadcast_to(ss, (nz, n_modes, 2 * nx))

    p2 = p2_ref[...]                     # constant step operator, bf16

    # ---- serial split-step BPM z loop ---------------------------------------
    def step(e, k):
        # free-space stage: one real-embedded complex matmul   e <- e @ P
        h = jnp.dot(e.astype(bf16), p2, preferred_element_type=f32)   # [M, 2Nx]
        # phase stage: e <- h * exp(i*phi[k]); re/im half swap at the 128-lane
        # boundary (pure vreg swap; replaces pltpu.roll per review).
        hs = jnp.concatenate([h[:, nx:], h[:, :nx]], axis=-1)         # [h_im|h_re]
        return h * cc_scr[k] + hs * ss_scr[k]

    e = e0_ref[...]                      # [M, 2Nx] f32 carry (detuning folded in)
    if nz <= 32:
        for k in range(nz):              # full unroll, static phase-table slices
            e = step(e, k)
    else:                                # deep BPM stacks: partial unroll
        e = lax.fori_loop(0, nz, lambda k, e: step(e, k), e, unroll=8)

    # ---- fused projection onto output modes:  u = [a_re | a_im] -------------
    u_ref[...] = jnp.dot(e.astype(bf16), moT2_ref[...],
                         preferred_element_type=f32)


def tdwg_forward_pallas(mods, Sz, SxT, bg, e0_block, P2, MoT2,
                        *, nz, nx, n_modes, designs_per_block,
                        k0_dz, delta_n_val):
    B = mods.shape[0]
    G = designs_per_block
    assert B % G == 0, "batch must be divisible by designs_per_block"
    nblocks = B // G
    M = G * n_modes

    kernel = functools.partial(
        tdwg_kernel, nz=nz, nx=nx, n_modes=n_modes, g_designs=G,
        k0_dz=k0_dz, delta_n_val=delta_n_val)

    # Advisory cost hint for the XLA scheduler (per-call fixed costs dominate at
    # this size; batching B designs per call amortizes them).
    flops_per_block = (
        G * (2 * nz * nz * nx + 2 * nz * nx * nx)           # smoothen
        + nz * 2 * M * (2 * nx) * (2 * nx)                  # BPM z loop
        + 2 * M * (2 * nx) * (2 * n_modes))                 # projection
    inputs = (mods, Sz, SxT, bg, e0_block, P2, MoT2)
    bytes_accessed = sum(int(np.prod(a.shape)) * a.dtype.itemsize for a in inputs)
    bytes_accessed += B * n_modes * 2 * n_modes * 4
    cost = pl.CostEstimate(flops=int(nblocks * flops_per_block),
                           transcendentals=int(2 * B * nz * nx),
                           bytes_accessed=int(bytes_accessed))

    u = pl.pallas_call(
        kernel,
        out_shape=jax.ShapeDtypeStruct((B * n_modes, 2 * n_modes), jnp.float32),
        grid=(nblocks,),
        in_specs=[
            pl.BlockSpec((G, nz, nx), lambda i: (i, 0, 0)),          # mods (per block)
            pl.BlockSpec((nz, nz), lambda i: (0, 0)),                # Sz
            pl.BlockSpec((nx, nx), lambda i: (0, 0)),                # SxT
            pl.BlockSpec((nz, nx), lambda i: (0, 0)),                # background dn
            pl.BlockSpec((M, 2 * nx), lambda i: (0, 0)),             # e0 (pr folded)
            pl.BlockSpec((2 * nx, 2 * nx), lambda i: (0, 0)),        # P2 (bf16)
            pl.BlockSpec((2 * nx, 2 * n_modes), lambda i: (0, 0)),   # MoT2 (bf16)
        ],
        out_specs=pl.BlockSpec((M, 2 * n_modes), lambda i: (i, 0)),
        scratch_shapes=[pltpu.VMEM((nz, M, 2 * nx), jnp.float32),
                        pltpu.VMEM((nz, M, 2 * nx), jnp.float32)],
        compiler_params=pltpu.CompilerParams(
            dimension_semantics=("parallel",)),   # shards design blocks across TCs (v7x)
        cost_estimate=cost,
    )(*inputs)

    u = u.reshape(B, n_modes, 2 * n_modes)
    return u[..., :n_modes], u[..., n_modes:]


# ---------------------------------------------------------------------------
# pure-JAX complex reference with the UNFUSED W / H / Wi formulation and the
# detuning phase applied at the end (original ordering) — validates the
# folded-P, folded-pr, bf16, real-embedded kernel.
# ---------------------------------------------------------------------------
def tdwg_forward_ref(mod, Sz, SxT, bg, ein, W, Wi, Hd, moT, pr,
                     *, nz, k0_dz, delta_n_val):
    mod = jnp.clip(mod, 0.0, 1.0)
    mod_f = Sz @ mod @ SxT
    phi = k0_dz * (bg + delta_n_val * mod_f)
    e = ein
    for k in range(nz):
        e = ((e @ W) * Hd[None, :]) @ Wi
        e = e * jnp.exp(1j * phi[k:k + 1, :])
    a = e @ moT
    u = a * pr
    return jnp.real(u), jnp.imag(u)


if __name__ == "__main__":
    key = jax.random.PRNGKey(0)
    k_ev, k_bg, k_mod = jax.random.split(key, 3)

    Nz, Nx = 8, 128          # wg grid (z steps x transverse samples)
    n_modes = 8              # number of eigenmodes in Evecs / betas
    B = 4                    # candidate designs per call (inverse-design batching)
    G = 2                    # designs stacked along the MXU row dim per grid step
    dz, dx = 1.0, 0.5
    Lz = Nz * dz
    k_cprog = 2.0
    delta_n_val = 0.02
    k0 = 2.0 * np.pi / 1.55  # vacuum wavenumber for the stand-in BPM
    n0 = 1.5

    # Parameters / buffers (deterministic, per __init__ shapes)
    mod0 = 0.5 * jnp.ones((1, Nz, Nx), jnp.float32)                  # self.mod init
    mod_rest = 0.5 + 0.25 * jax.random.uniform(
        k_mod, (B - 1, Nz, Nx), jnp.float32, minval=-1.0, maxval=1.0)
    mods = jnp.concatenate([mod0, mod_rest], axis=0)                 # [B, Nz, Nx]
    background_dn = 1e-4 * jax.random.normal(k_bg, (Nz, Nx), jnp.float32)
    Evecs = jax.random.normal(k_ev, (n_modes, Nx), jnp.float32) / np.sqrt(Nx)
    betas = jnp.linspace(5.8, 6.0, n_modes).astype(jnp.float32)
    indices = jnp.arange(n_modes)
    # TODO(synk): the fast_flag=False path (run_simulation_slow), indices=None
    # default, and the pnn_utils.Parameter limits reparametrization are not
    # implemented; only the fast indexed forward (which clips mod to [0,1]) is.

    # smoothen() operators (separable real equivalent of fft2 -> gaussian -> ifft2.real)
    Sz = jnp.asarray(_smoothing_matrix(Nz, dz, k_cprog))
    SxT = jnp.asarray(_smoothing_matrix(Nx, dx, k_cprog).T)

    # DFT matrices + free-space propagator; fold W @ diag(H) @ Wi into one
    # constant complex operator P, real-embed it as a 2Nx x 2Nx block matrix,
    # and cast to bf16 (carry/accumulation stay f32 in the kernel).
    jk = np.outer(np.arange(Nx), np.arange(Nx))
    W = np.exp(-2j * np.pi * jk / Nx)
    Wi = np.exp(2j * np.pi * jk / Nx) / Nx
    kx = 2.0 * np.pi * np.fft.fftfreq(Nx, d=dx)
    Hd = np.exp(-1j * (kx ** 2) * dz / (2.0 * k0 * n0))
    P = W @ np.diag(Hd) @ Wi                                         # [Nx, Nx] complex
    P2 = jnp.asarray(
        np.block([[np.real(P), np.imag(P)],
                  [-np.imag(P), np.real(P)]]).astype(np.float32)).astype(jnp.bfloat16)

    # fused projection operand: u = e @ [MoTa | MoTb] = [a_re | a_im]
    moT_re = np.asarray(Evecs * dx).T.astype(np.float32)             # [Nx, n_modes]
    moT_im = np.zeros_like(moT_re)
    MoTa = np.concatenate([moT_re, -moT_im], axis=0)                 # a_re = e @ MoTa
    MoTb = np.concatenate([moT_im, moT_re], axis=0)                  # a_im = e @ MoTb
    MoT2 = jnp.asarray(np.concatenate([MoTa, MoTb], axis=1)).astype(jnp.bfloat16)

    # input beams (= Evecs[indices], zero imag) with the per-row detuning phase
    # exp(-1j*betas[indices]*Lz) folded in (pipeline is linear per row).
    ein_re = np.asarray(Evecs)[np.asarray(indices)]                  # [n_modes, Nx]
    pr_re = np.cos(np.asarray(betas) * Lz)[:, None]
    pr_im = -np.sin(np.asarray(betas) * Lz)[:, None]
    e0_one = np.concatenate([ein_re * pr_re, ein_re * pr_im], axis=-1)
    e0_block = jnp.asarray(np.tile(e0_one, (G, 1)).astype(np.float32))   # [G*n_modes, 2Nx]

    u_re, u_im = tdwg_forward_pallas(
        mods, Sz, SxT, background_dn, e0_block, P2, MoT2,
        nz=Nz, nx=Nx, n_modes=n_modes, designs_per_block=G,
        k0_dz=k0 * dz, delta_n_val=delta_n_val)
    jax.block_until_ready((u_re, u_im))

    # reference (complex64, unfused formulation), validated per design
    W_c = jnp.asarray(W, jnp.complex64)
    Wi_c = jnp.asarray(Wi, jnp.complex64)
    Hd_c = jnp.asarray(Hd, jnp.complex64)
    moT_c = jnp.asarray(moT_re + 1j * moT_im, jnp.complex64)
    pr_c = jnp.asarray(pr_re + 1j * pr_im, jnp.complex64)
    ein_c = jnp.asarray(ein_re, jnp.complex64)
    for b in range(B):
        r_re, r_im = tdwg_forward_ref(
            mods[b], Sz, SxT, background_dn, ein_c, W_c, Wi_c, Hd_c, moT_c, pr_c,
            nz=Nz, k0_dz=k0 * dz, delta_n_val=delta_n_val)
        # bf16 matmul operands over nz split steps (f32 carry/accumulation):
        # tolerance sized for bf16 operand rounding accumulated over the z loop.
        np.testing.assert_allclose(np.asarray(u_re[b]), np.asarray(r_re),
                                   rtol=5e-2, atol=2e-2)
        np.testing.assert_allclose(np.asarray(u_im[b]), np.asarray(r_im),
                                   rtol=5e-2, atol=2e-2)
    assert np.isfinite(np.asarray(u_re)).all() and np.isfinite(np.asarray(u_im)).all()

    print("KERNEL_OK")
</pallas_src>

<mosaic_0001>
module attributes {stable_mosaic.version = 11 : i64} {
  func.func @tdwg_kernel(%arg0: i32, %arg1: memref<2x8x128xf32, #tpu.memory_space<vmem>>, %arg2: memref<8x8xf32, #tpu.memory_space<vmem>>, %arg3: memref<128x128xf32, #tpu.memory_space<vmem>>, %arg4: memref<8x128xf32, #tpu.memory_space<vmem>>, %arg5: memref<16x256xf32, #tpu.memory_space<vmem>>, %arg6: memref<256x256xbf16, #tpu.memory_space<vmem>>, %arg7: memref<256x16xbf16, #tpu.memory_space<vmem>>, %arg8: memref<16x16xf32, #tpu.memory_space<vmem>>, %arg9: memref<8x16x256xf32, #tpu.memory_space<vmem>>, %arg10: memref<8x16x256xf32, #tpu.memory_space<vmem>>) attributes {dimension_semantics = [#tpu.dimension_semantics<parallel>], iteration_bounds = array<i64: 2>, scalar_prefetch = 0 : i64, scratch_operands = 2 : i64, tpu.core_type = #tpu.core_type<tc>, window_params = [{transform_indices = @transform_0, window_bounds = array<i64: 2, 8, 128>}, {pipeline_mode = #tpu.pipeline_mode<synchronous>, transform_indices = @transform_1, window_bounds = array<i64: 8, 8>}, {pipeline_mode = #tpu.pipeline_mode<synchronous>, transform_indices = @transform_2, window_bounds = array<i64: 128, 128>}, {pipeline_mode = #tpu.pipeline_mode<synchronous>, transform_indices = @transform_3, window_bounds = array<i64: 8, 128>}, {pipeline_mode = #tpu.pipeline_mode<synchronous>, transform_indices = @transform_4, window_bounds = array<i64: 16, 256>}, {pipeline_mode = #tpu.pipeline_mode<synchronous>, transform_indices = @transform_5, window_bounds = array<i64: 256, 256>}, {pipeline_mode = #tpu.pipeline_mode<synchronous>, transform_indices = @transform_6, window_bounds = array<i64: 256, 16>}, {transform_indices = @transform_7, window_bounds = array<i64: 16, 16>}]} {
    %c0 = arith.constant 0 : index
    %c0_0 = arith.constant 0 : index
    %c0_1 = arith.constant 0 : index
    %0 = vector.load %arg1[%c0, %c0_0, %c0_1] : memref<2x8x128xf32, #tpu.memory_space<vmem>>, vector<1x8x128xf32>
    %1 = vector.shape_cast %0 : vector<1x8x128xf32> to vector<8x128xf32>
    %cst = arith.constant 0.000000e+00 : f32
    %cst_2 = arith.constant 1.000000e+00 : f32
    %2 = vector.broadcast %cst : f32 to vector<8x128xf32>
    %3 = arith.maximumf %2, %1 : vector<8x128xf32>
    %4 = vector.broadcast %cst_2 : f32 to vector<8x128xf32>
    %5 = arith.minimumf %4, %3 : vector<8x128xf32>
    %c0_3 = arith.constant 0 : index
    %c0_4 = arith.constant 0 : index
    %6 = vector.load %arg2[%c0_3, %c0_4] : memref<8x8xf32, #tpu.memory_space<vmem>>, vector<8x8xf32>
    %cst_5 = arith.constant dense<0.000000e+00> : vector<8x128xf32>
    %7 = tpu.matmul %6, %5, %cst_5 {dimension_numbers = #tpu.dot_dimension_numbers<[1], [0], [0], [1], [0, 0, 1, 1], [], []>} : vector<8x8xf32>, vector<8x128xf32>, vector<8x128xf32> -> vector<8x128xf32>
    %c0_6 = arith.constant 0 : index
    %c0_7 = arith.constant 0 : index
    %8 = vector.load %arg3[%c0_6, %c0_7] : memref<128x128xf32, #tpu.memory_space<vmem>>, vector<128x128xf32>
    %cst_8 = arith.constant dense<0.000000e+00> : vector<8x128xf32>
    %9 = tpu.matmul %7, %8, %cst_8 {dimension_numbers = #tpu.dot_dimension_numbers<[1], [0], [0], [1], [0, 0, 1, 1], [], []>} : vector<8x128xf32>, vector<128x128xf32>, vector<8x128xf32> -> vector<8x128xf32>
    %c0_9 = arith.constant 0 : index
    %c0_10 = arith.constant 0 : index
    %10 = vector.load %arg4[%c0_9, %c0_10] : memref<8x128xf32, #tpu.memory_space<vmem>>, vector<8x128xf32>
    %cst_11 = arith.constant 2.000000e-02 : f32
    %11 = vector.broadcast %cst_11 : f32 to vector<8x128xf32>
    %12 = arith.mulf %11, %9 : vector<8x128xf32>
    %13 = arith.addf %10, %12 : vector<8x128xf32>
    %cst_12 = arith.constant 4.05366802 : f32
    %14 = vector.broadcast %cst_12 : f32 to vector<8x128xf32>
    %15 = arith.mulf %14, %13 : vector<8x128xf32>
    %16 = math.cos %15 : vector<8x128xf32>
    %17 = math.sin %15 : vector<8x128xf32>
    %18 = tpu.concatenate %16, %16 in 1 : vector<8x128xf32>, vector<8x128xf32> -> vector<8x256xf32>
    %19 = vector.shape_cast %18 : vector<8x256xf32> to vector<8x1x256xf32>
    %cst_13 = arith.constant 0.000000e+00 : f32
    %20 = vector.broadcast %cst_13 : f32 to vector<8x128xf32>
    %21 = arith.subf %20, %17 : vector<8x128xf32>
    %22 = tpu.concatenate %21, %17 in 1 : vector<8x128xf32>, vector<8x128xf32> -> vector<8x256xf32>
    %23 = vector.shape_cast %22 : vector<8x256xf32> to vector<8x1x256xf32>
    %24 = vector.shape_cast %19 : vector<8x1x256xf32> to vector<8x1x256xf32>
    %25 = vector.broadcast %24 : vector<8x1x256xf32> to vector<8x8x256xf32>
    %c0_14 = arith.constant 0 : index
    %c0_15 = arith.constant 0 : index
    %c0_16 = arith.constant 0 : index
    %26 = vector.load %arg9[%c0_14, %c0_15, %c0_16] : memref<8x16x256xf32, #tpu.memory_space<vmem>>, vector<8x8x256xf32>
    tpu.vector_store %arg9[%c0_14, %c0_15, %c0_16], %25 {strides = array<i32>} : memref<8x16x256xf32, #tpu.memory_space<vmem>>, vector<8x8x256xf32>,
    %27 = vector.shape_cast %23 : vector<8x1x256xf32> to vector<8x1x256xf32>
    %28 = vector.broadcast %27 : vector<8x1x256xf32> to vector<8x8x256xf32>
    %c0_17 = arith.constant 0 : index
    %c0_18 = arith.constant 0 : index
    %c0_19 = arith.constant 0 : index
    %29 = vector.load %arg10[%c0_17, %c0_18, %c0_19] : memref<8x16x256xf32, #tpu.memory_space<vmem>>, vector<8x8x256xf32>
    tpu.vector_store %arg10[%c0_17, %c0_18, %c0_19], %28 {strides = array<i32>} : memref<8x16x256xf32, #tpu.memory_space<vmem>>, vector<8x8x256xf32>,
    %c1 = arith.constant 1 : index
    %c0_20 = arith.constant 0 : index
    %c0_21 = arith.constant 0 : index
    %30 = vector.load %arg1[%c1, %c0_20, %c0_21] : memref<2x8x128xf32, #tpu.memory_space<vmem>>, vector<1x8x128xf32>
    %31 = vector.shape_cast %30 : vector<1x8x128xf32> to vector<8x128xf32>
    %cst_22 = arith.constant 0.000000e+00 : f32
    %cst_23 = arith.constant 1.000000e+00 : f32
    %32 = vector.broadcast %cst_22 : f32 to vector<8x128xf32>
    %33 = arith.maximumf %32, %31 : vector<8x128xf32>
    %34 = vector.broadcast %cst_23 : f32 to vector<8x128xf32>
    %35 = arith.minimumf %34, %33 : vector<8x128xf32>
    %c0_24 = arith.constant 0 : index
    %c0_25 = arith.constant 0 : index
    %36 = vector.load %arg2[%c0_24, %c0_25] : memref<8x8xf32, #tpu.memory_space<vmem>>, vector<8x8xf32>
    %cst_26 = arith.constant dense<0.000000e+00> : vector<8x128xf32>
    %37 = tpu.matmul %36, %35, %cst_26 {dimension_numbers = #tpu.dot_dimension_numbers<[1], [0], [0], [1], [0, 0, 1, 1], [], []>} : vector<8x8xf32>, vector<8x128xf32>, vector<8x128xf32> -> vector<8x128xf32>
    %c0_27 = arith.constant 0 : index
    %c0_28 = arith.constant 0 : index
    %38 = vector.load %arg3[%c0_27, %c0_28] : memref<128x128xf32, #tpu.memory_space<vmem>>, vector<128x128xf32>
    %cst_29 = arith.constant dense<0.000000e+00> : vector<8x128xf32>
    %39 = tpu.matmul %37, %38, %cst_29 {dimension_numbers = #tpu.dot_dimension_numbers<[1], [0], [0], [1], [0, 0, 1, 1], [], []>} : vector<8x128xf32>, vector<128x128xf32>, vector<8x128xf32> -> vector<8x128xf32>
    %c0_30 = arith.constant 0 : index
    %c0_31 = arith.constant 0 : index
    %40 = vector.load %arg4[%c0_30, %c0_31] : memref<8x128xf32, #tpu.memory_space<vmem>>, vector<8x128xf32>
    %cst_32 = arith.constant 2.000000e-02 : f32
    %41 = vector.broadcast %cst_32 : f32 to vector<8x128xf32>
    %42 = arith.mulf %41, %39 : vector<8x128xf32>
    %43 = arith.addf %40, %42 : vector<8x128xf32>
    %cst_33 = arith.constant 4.05366802 : f32
    %44 = vector.broadcast %cst_33 : f32 to vector<8x128xf32>
    %45 = arith.mulf %44, %43 : vector<8x128xf32>
    %46 = math.cos %45 : vector<8x128xf32>
    %47 = math.sin %45 : vector<8x128xf32>
    %48 = tpu.concatenate %46, %46 in 1 : vector<8x128xf32>, vector<8x128xf32> -> vector<8x256xf32>
    %49 = vector.shape_cast %48 : vector<8x256xf32> to vector<8x1x256xf32>
    %cst_34 = arith.constant 0.000000e+00 : f32
    %50 = vector.broadcast %cst_34 : f32 to vector<8x128xf32>
    %51 = arith.subf %50, %47 : vector<8x128xf32>
    %52 = tpu.concatenate %51, %47 in 1 : vector<8x128xf32>, vector<8x128xf32> -> vector<8x256xf32>
    %53 = vector.shape_cast %52 : vector<8x256xf32> to vector<8x1x256xf32>
    %54 = vector.shape_cast %49 : vector<8x1x256xf32> to vector<8x1x256xf32>
    %55 = vector.broadcast %54 : vector<8x1x256xf32> to vector<8x8x256xf32>
    %c0_35 = arith.constant 0 : index
    %c8 = arith.constant 8 : index
    %c0_36 = arith.constant 0 : index
    %56 = vector.load %arg9[%c0_35, %c8, %c0_36] : memref<8x16x256xf32, #tpu.memory_space<vmem>>, vector<8x8x256xf32>
    tpu.vector_store %arg9[%c0_35, %c8, %c0_36], %55 {strides = array<i32>} : memref<8x16x256xf32, #tpu.memory_space<vmem>>, vector<8x8x256xf32>,
    %57 = vector.shape_cast %53 : vector<8x1x256xf32> to vector<8x1x256xf32>
    %58 = vector.broadcast %57 : vector<8x1x256xf32> to vector<8x8x256xf32>
    %c0_37 = arith.constant 0 : index
    %c8_38 = arith.constant 8 : index
    %c0_39 = arith.constant 0 : index
    %59 = vector.load %arg10[%c0_37, %c8_38, %c0_39] : memref<8x16x256xf32, #tpu.memory_space<vmem>>, vector<8x8x256xf32>
    tpu.vector_store %arg10[%c0_37, %c8_38, %c0_39], %58 {strides = array<i32>} : memref<8x16x256xf32, #tpu.memory_space<vmem>>, vector<8x8x256xf32>,
    %c0_40 = arith.constant 0 : index
    %c0_41 = arith.constant 0 : index
    %60 = vector.load %arg6[%c0_40, %c0_41] : memref<256x256xbf16, #tpu.memory_space<vmem>>, vector<256x256xbf16>
    %c0_42 = arith.constant 0 : index
    %c0_43 = arith.constant 0 : index
    %61 = vector.load %arg5[%c0_42, %c0_43] : memref<16x256xf32, #tpu.memory_space<vmem>>, vector<16x256xf32>
    %62 = arith.truncf %61 : vector<16x256xf32> to vector<16x256xbf16>
    %cst_44 = arith.constant dense<0.000000e+00> : vector<16x256xf32>
    %63 = tpu.matmul %62, %60, %cst_44 {dimension_numbers = #tpu.dot_dimension_numbers<[1], [0], [0], [1], [0, 0, 1, 1], [], []>} : vector<16x256xbf16>, vector<256x256xbf16>, vector<16x256xf32> -> vector<16x256xf32>
    %64 = vector.extract_strided_slice %63 {offsets = [0, 128], sizes = [16, 128], strides = [1, 1]} : vector<16x256xf32> to vector<16x128xf32>
    %65 = vector.extract_strided_slice %63 {offsets = [0, 0], sizes = [16, 128], strides = [1, 1]} : vector<16x256xf32> to vector<16x128xf32>
    %66 = tpu.concatenate %64, %65 in 1 : vector<16x128xf32>, vector<16x128xf32> -> vector<16x256xf32>
    %c0_45 = arith.constant 0 : index
    %c0_46 = arith.constant 0 : index
    %c0_47 = arith.constant 0 : index
    %67 = vector.load %arg9[%c0_45, %c0_46, %c0_47] : memref<8x16x256xf32, #tpu.memory_space<vmem>>, vector<1x16x256xf32>
    %68 = vector.shape_cast %67 : vector<1x16x256xf32> to vector<16x256xf32>
    %69 = arith.mulf %63, %68 : vector<16x256xf32>
    %c0_48 = arith.constant 0 : index
    %c0_49 = arith.constant 0 : index
    %c0_50 = arith.constant 0 : index
    %70 = vector.load %arg10[%c0_48, %c0_49, %c0_50] : memref<8x16x256xf32, #tpu.memory_space<vmem>>, vector<1x16x256xf32>
    %71 = vector.shape_cast %70 : vector<1x16x256xf32> to vector<16x256xf32>
    %72 = arith.mulf %66, %71 : vector<16x256xf32>
    %73 = arith.addf %69, %72 : vector<16x256xf32>
    %74 = arith.truncf %73 : vector<16x256xf32> to vector<16x256xbf16>
    %cst_51 = arith.constant dense<0.000000e+00> : vector<16x256xf32>
    %75 = tpu.matmul %74, %60, %cst_51 {dimension_numbers = #tpu.dot_dimension_numbers<[1], [0], [0], [1], [0, 0, 1, 1], [], []>} : vector<16x256xbf16>, vector<256x256xbf16>, vector<16x256xf32> -> vector<16x256xf32>
    %76 = vector.extract_strided_slice %75 {offsets = [0, 128], sizes = [16, 128], strides = [1, 1]} : vector<16x256xf32> to vector<16x128xf32>
    %77 = vector.extract_strided_slice %75 {offsets = [0, 0], sizes = [16, 128], strides = [1, 1]} : vector<16x256xf32> to vector<16x128xf32>
    %78 = tpu.concatenate %76, %77 in 1 : vector<16x128xf32>, vector<16x128xf32> -> vector<16x256xf32>
    %c1_52 = arith.constant 1 : index
    %c0_53 = arith.constant 0 : index
    %c0_54 = arith.constant 0 : index
    %79 = vector.load %arg9[%c1_52, %c0_53, %c0_54] : memref<8x16x256xf32, #tpu.memory_space<vmem>>, vector<1x16x256xf32>
    %80 = vector.shape_cast %79 : vector<1x16x256xf32> to vector<16x256xf32>
    %81 = arith.mulf %75, %80 : vector<16x256xf32>
    %c1_55 = arith.constant 1 : index
    %c0_56 = arith.constant 0 : index
    %c0_57 = arith.constant 0 : index
    %82 = vector.load %arg10[%c1_55, %c0_56, %c0_57] : memref<8x16x256xf32, #tpu.memory_space<vmem>>, vector<1x16x256xf32>
    %83 = vector.shape_cast %82 : vector<1x16x256xf32> to vector<16x256xf32>
    %84 = arith.mulf %78, %83 : vector<16x256xf32>
    %85 = arith.addf %81, %84 : vector<16x256xf32>
    %86 = arith.truncf %85 : vector<16x256xf32> to vector<16x256xbf16>
    %cst_58 = arith.constant dense<0.000000e+00> : vector<16x256xf32>
    %87 = tpu.matmul %86, %60, %cst_58 {dimension_numbers = #tpu.dot_dimension_numbers<[1], [0], [0], [1], [0, 0, 1, 1], [], []>} : vector<16x256xbf16>, vector<256x256xbf16>, vector<16x256xf32> -> vector<16x256xf32>
    %88 = vector.extract_strided_slice %87 {offsets = [0, 128], sizes = [16, 128], strides = [1, 1]} : vector<16x256xf32> to vector<16x128xf32>
    %89 = vector.extract_strided_slice %87 {offsets = [0, 0], sizes = [16, 128], strides = [1, 1]} : vector<16x256xf32> to vector<16x128xf32>
    %90 = tpu.concatenate %88, %89 in 1 : vector<16x128xf32>, vector<16x128xf32> -> vector<16x256xf32>
    %c2 = arith.constant 2 : index
    %c0_59 = arith.constant 0 : index
    %c0_60 = arith.constant 0 : index
    %91 = vector.load %arg9[%c2, %c0_59, %c0_60] : memref<8x16x256xf32, #tpu.memory_space<vmem>>, vector<1x16x256xf32>
    %92 = vector.shape_cast %91 : vector<1x16x256xf32> to vector<16x256xf32>
    %93 = arith.mulf %87, %92 : vector<16x256xf32>
    %c2_61 = arith.constant 2 : index
    %c0_62 = arith.constant 0 : index
    %c0_63 = arith.constant 0 : index
    %94 = vector.load %arg10[%c2_61, %c0_62, %c0_63] : memref<8x16x256xf32, #tpu.memory_space<vmem>>, vector<1x16x256xf32>
    %95 = vector.shape_cast %94 : vector<1x16x256xf32> to vector<16x256xf32>
    %96 = arith.mulf %90, %95 : vector<16x256xf32>
    %97 = arith.addf %93, %96 : vector<16x256xf32>
    %98 = arith.truncf %97 : vector<16x256xf32> to vector<16x256xbf16>
    %cst_64 = arith.constant dense<0.000000e+00> : vector<16x256xf32>
    %99 = tpu.matmul %98, %60, %cst_64 {dimension_numbers = #tpu.dot_dimension_numbers<[1], [0], [0], [1], [0, 0, 1, 1], [], []>} : vector<16x256xbf16>, vector<256x256xbf16>, vector<16x256xf32> -> vector<16x256xf32>
    %100 = vector.extract_strided_slice %99 {offsets = [0, 128], sizes = [16, 128], strides = [1, 1]} : vector<16x256xf32> to vector<16x128xf32>
    %101 = vector.extract_strided_slice %99 {offsets = [0, 0], sizes = [16, 128], strides = [1, 1]} : vector<16x256xf32> to vector<16x128xf32>
    %102 = tpu.concatenate %100, %101 in 1 : vector<16x128xf32>, vector<16x128xf32> -> vector<16x256xf32>
    %c3 = arith.constant 3 : index
    %c0_65 = arith.constant 0 : index
    %c0_66 = arith.constant 0 : index
    %103 = vector.load %arg9[%c3, %c0_65, %c0_66] : memref<8x16x256xf32, #tpu.memory_space<vmem>>, vector<1x16x256xf32>
    %104 = vector.shape_cast %103 : vector<1x16x256xf32> to vector<16x256xf32>
    %105 = arith.mulf %99, %104 : vector<16x256xf32>
    %c3_67 = arith.constant 3 : index
    %c0_68 = arith.constant 0 : index
    %c0_69 = arith.constant 0 : index
    %106 = vector.load %arg10[%c3_67, %c0_68, %c0_69] : memref<8x16x256xf32, #tpu.memory_space<vmem>>, vector<1x16x256xf32>
    %107 = vector.shape_cast %106 : vector<1x16x256xf32> to vector<16x256xf32>
    %108 = arith.mulf %102, %107 : vector<16x256xf32>
    %109 = arith.addf %105, %108 : vector<16x256xf32>
    %110 = arith.truncf %109 : vector<16x256xf32> to vector<16x256xbf16>
    %cst_70 = arith.constant dense<0.000000e+00> : vector<16x256xf32>
    %111 = tpu.matmul %110, %60, %cst_70 {dimension_numbers = #tpu.dot_dimension_numbers<[1], [0], [0], [1], [0, 0, 1, 1], [], []>} : vector<16x256xbf16>, vector<256x256xbf16>, vector<16x256xf32> -> vector<16x256xf32>
    %112 = vector.extract_strided_slice %111 {offsets = [0, 128], sizes = [16, 128], strides = [1, 1]} : vector<16x256xf32> to vector<16x128xf32>
    %113 = vector.extract_strided_slice %111 {offsets = [0, 0], sizes = [16, 128], strides = [1, 1]} : vector<16x256xf32> to vector<16x128xf32>
    %114 = tpu.concatenate %112, %113 in 1 : vector<16x128xf32>, vector<16x128xf32> -> vector<16x256xf32>
    %c4 = arith.constant 4 : index
    %c0_71 = arith.constant 0 : index
    %c0_72 = arith.constant 0 : index
    %115 = vector.load %arg9[%c4, %c0_71, %c0_72] : memref<8x16x256xf32, #tpu.memory_space<vmem>>, vector<1x16x256xf32>
    %116 = vector.shape_cast %115 : vector<1x16x256xf32> to vector<16x256xf32>
    %117 = arith.mulf %111, %116 : vector<16x256xf32>
    %c4_73 = arith.constant 4 : index
    %c0_74 = arith.constant 0 : index
    %c0_75 = arith.constant 0 : index
    %118 = vector.load %arg10[%c4_73, %c0_74, %c0_75] : memref<8x16x256xf32, #tpu.memory_space<vmem>>, vector<1x16x256xf32>
    %119 = vector.shape_cast %118 : vector<1x16x256xf32> to vector<16x256xf32>
    %120 = arith.mulf %114, %119 : vector<16x256xf32>
    %121 = arith.addf %117, %120 : vector<16x256xf32>
    %122 = arith.truncf %121 : vector<16x256xf32> to vector<16x256xbf16>
    %cst_76 = arith.constant dense<0.000000e+00> : vector<16x256xf32>
    %123 = tpu.matmul %122, %60, %cst_76 {dimension_numbers = #tpu.dot_dimension_numbers<[1], [0], [0], [1], [0, 0, 1, 1], [], []>} : vector<16x256xbf16>, vector<256x256xbf16>, vector<16x256xf32> -> vector<16x256xf32>
    %124 = vector.extract_strided_slice %123 {offsets = [0, 128], sizes = [16, 128], strides = [1, 1]} : vector<16x256xf32> to vector<16x128xf32>
    %125 = vector.extract_strided_slice %123 {offsets = [0, 0], sizes = [16, 128], strides = [1, 1]} : vector<16x256xf32> to vector<16x128xf32>
    %126 = tpu.concatenate %124, %125 in 1 : vector<16x128xf32>, vector<16x128xf32> -> vector<16x256xf32>
    %c5 = arith.constant 5 : index
    %c0_77 = arith.constant 0 : index
    %c0_78 = arith.constant 0 : index
    %127 = vector.load %arg9[%c5, %c0_77, %c0_78] : memref<8x16x256xf32, #tpu.memory_space<vmem>>, vector<1x16x256xf32>
    %128 = vector.shape_cast %127 : vector<1x16x256xf32> to vector<16x256xf32>
    %129 = arith.mulf %123, %128 : vector<16x256xf32>
    %c5_79 = arith.constant 5 : index
    %c0_80 = arith.constant 0 : index
    %c0_81 = arith.constant 0 : index
    %130 = vector.load %arg10[%c5_79, %c0_80, %c0_81] : memref<8x16x256xf32, #tpu.memory_space<vmem>>, vector<1x16x256xf32>
    %131 = vector.shape_cast %130 : vector<1x16x256xf32> to vector<16x256xf32>
    %132 = arith.mulf %126, %131 : vector<16x256xf32>
    %133 = arith.addf %129, %132 : vector<16x256xf32>
    %134 = arith.truncf %133 : vector<16x256xf32> to vector<16x256xbf16>
    %cst_82 = arith.constant dense<0.000000e+00> : vector<16x256xf32>
    %135 = tpu.matmul %134, %60, %cst_82 {dimension_numbers = #tpu.dot_dimension_numbers<[1], [0], [0], [1], [0, 0, 1, 1], [], []>} : vector<16x256xbf16>, vector<256x256xbf16>, vector<16x256xf32> -> vector<16x256xf32>
    %136 = vector.extract_strided_slice %135 {offsets = [0, 128], sizes = [16, 128], strides = [1, 1]} : vector<16x256xf32> to vector<16x128xf32>
    %137 = vector.extract_strided_slice %135 {offsets = [0, 0], sizes = [16, 128], strides = [1, 1]} : vector<16x256xf32> to vector<16x128xf32>
    %138 = tpu.concatenate %136, %137 in 1 : vector<16x128xf32>, vector<16x128xf32> -> vector<16x256xf32>
    %c6 = arith.constant 6 : index
    %c0_83 = arith.constant 0 : index
    %c0_84 = arith.constant 0 : index
    %139 = vector.load %arg9[%c6, %c0_83, %c0_84] : memref<8x16x256xf32, #tpu.memory_space<vmem>>, vector<1x16x256xf32>
    %140 = vector.shape_cast %139 : vector<1x16x256xf32> to vector<16x256xf32>
    %141 = arith.mulf %135, %140 : vector<16x256xf32>
    %c6_85 = arith.constant 6 : index
    %c0_86 = arith.constant 0 : index
    %c0_87 = arith.constant 0 : index
    %142 = vector.load %arg10[%c6_85, %c0_86, %c0_87] : memref<8x16x256xf32, #tpu.memory_space<vmem>>, vector<1x16x256xf32>
    %143 = vector.shape_cast %142 : vector<1x16x256xf32> to vector<16x256xf32>
    %144 = arith.mulf %138, %143 : vector<16x256xf32>
    %145 = arith.addf %141, %144 : vector<16x256xf32>
    %146 = arith.truncf %145 : vector<16x256xf32> to vector<16x256xbf16>
    %cst_88 = arith.constant dense<0.000000e+00> : vector<16x256xf32>
    %147 = tpu.matmul %146, %60, %cst_88 {dimension_numbers = #tpu.dot_dimension_numbers<[1], [0], [0], [1], [0, 0, 1, 1], [], []>} : vector<16x256xbf16>, vector<256x256xbf16>, vector<16x256xf32> -> vector<16x256xf32>
    %148 = vector.extract_strided_slice %147 {offsets = [0, 128], sizes = [16, 128], strides = [1, 1]} : vector<16x256xf32> to vector<16x128xf32>
    %149 = vector.extract_strided_slice %147 {offsets = [0, 0], sizes = [16, 128], strides = [1, 1]} : vector<16x256xf32> to vector<16x128xf32>
    %150 = tpu.concatenate %148, %149 in 1 : vector<16x128xf32>, vector<16x128xf32> -> vector<16x256xf32>
    %c7 = arith.constant 7 : index
    %c0_89 = arith.constant 0 : index
    %c0_90 = arith.constant 0 : index
    %151 = vector.load %arg9[%c7, %c0_89, %c0_90] : memref<8x16x256xf32, #tpu.memory_space<vmem>>, vector<1x16x256xf32>
    %152 = vector.shape_cast %151 : vector<1x16x256xf32> to vector<16x256xf32>
    %153 = arith.mulf %147, %152 : vector<16x256xf32>
    %c7_91 = arith.constant 7 : index
    %c0_92 = arith.constant 0 : index
    %c0_93 = arith.constant 0 : index
    %154 = vector.load %arg10[%c7_91, %c0_92, %c0_93] : memref<8x16x256xf32, #tpu.memory_space<vmem>>, vector<1x16x256xf32>
    %155 = vector.shape_cast %154 : vector<1x16x256xf32> to vector<16x256xf32>
    %156 = arith.mulf %150, %155 : vector<16x256xf32>
    %157 = arith.addf %153, %156 : vector<16x256xf32>
    %158 = arith.truncf %157 : vector<16x256xf32> to vector<16x256xbf16>
    %c0_94 = arith.constant 0 : index
    %c0_95 = arith.constant 0 : index
    %159 = vector.load %arg7[%c0_94, %c0_95] : memref<256x16xbf16, #tpu.memory_space<vmem>>, vector<256x16xbf16>
    %cst_96 = arith.constant dense<0.000000e+00> : vector<16x16xf32>
    %160 = tpu.matmul %158, %159, %cst_96 {dimension_numbers = #tpu.dot_dimension_numbers<[1], [0], [0], [1], [0, 0, 1, 1], [], []>} : vector<16x256xbf16>, vector<256x16xbf16>, vector<16x16xf32> -> vector<16x16xf32>
    %c0_97 = arith.constant 0 : index
    %c0_98 = arith.constant 0 : index
    %161 = vector.load %arg8[%c0_97, %c0_98] : memref<16x16xf32, #tpu.memory_space<vmem>>, vector<16x16xf32>
    tpu.vector_store %arg8[%c0_97, %c0_98], %160 {strides = array<i32>} : memref<16x16xf32, #tpu.memory_space<vmem>>, vector<16x16xf32>,
    return
  }
  func.func @transform_0(%arg0: i32) -> (i32, i32, i32) {
    %c0_i32 = arith.constant 0 : i32
    %c0_i32_0 = arith.constant 0 : i32
    %c0_i32_1 = arith.constant 0 : i32
    return %arg0, %c0_i32, %c0_i32_0 : i32, i32, i32
  }
  func.func @transform_1(%arg0: i32) -> (i32, i32) {
    %c0_i32 = arith.constant 0 : i32
    %c0_i32_0 = arith.constant 0 : i32
    %c0_i32_1 = arith.constant 0 : i32
    return %c0_i32, %c0_i32_0 : i32, i32
  }
  func.func @transform_2(%arg0: i32) -> (i32, i32) {
    %c0_i32 = arith.constant 0 : i32
    %c0_i32_0 = arith.constant 0 : i32
    %c0_i32_1 = arith.constant 0 : i32
    return %c0_i32, %c0_i32_0 : i32, i32
  }
  func.func @transform_3(%arg0: i32) -> (i32, i32) {
    %c0_i32 = arith.constant 0 : i32
    %c0_i32_0 = arith.constant 0 : i32
    %c0_i32_1 = arith.constant 0 : i32
    return %c0_i32, %c0_i32_0 : i32, i32
  }
  func.func @transform_4(%arg0: i32) -> (i32, i32) {
    %c0_i32 = arith.constant 0 : i32
    %c0_i32_0 = arith.constant 0 : i32
    %c0_i32_1 = arith.constant 0 : i32
    return %c0_i32, %c0_i32_0 : i32, i32
  }
  func.func @transform_5(%arg0: i32) -> (i32, i32) {
    %c0_i32 = arith.constant 0 : i32
    %c0_i32_0 = arith.constant 0 : i32
    %c0_i32_1 = arith.constant 0 : i32
    return %c0_i32, %c0_i32_0 : i32, i32
  }
  func.func @transform_6(%arg0: i32) -> (i32, i32) {
    %c0_i32 = arith.constant 0 : i32
    %c0_i32_0 = arith.constant 0 : i32
    %c0_i32_1 = arith.constant 0 : i32
    return %c0_i32, %c0_i32_0 : i32, i32
  }
  func.func @transform_7(%arg0: i32) -> (i32, i32) {
    %c0_i32 = arith.constant 0 : i32
    %c0_i32_0 = arith.constant 0 : i32
    return %arg0, %c0_i32 : i32, i32
  }
}

</mosaic_0001>

<bundles_post_ra>
// kernel: tpu_custom_call.1
= control target key start
LH: loop header
LB: loop body
LE: loop exit
PB: predicated region body
PF: predicated region fallthrough
CT: control target
= control target key end

     0   :  { %12 = vsyncpa [#allocation5], 0  ;;  %s4506_s0 = inlined_call_operand.hbm [shape: f32[4,8,128], index: 0, kind: input, shape index: {}]   ;;  %s4507_s1 = inlined_call_operand.vmem [shape: f32[8,8], index: 1, kind: input, shape index: {}]   ;;  %s4508_s2 = inlined_call_operand.vmem [shape: f32[128,128], index: 2, kind: input, shape index: {}]   ;;  %s4509_s3 = inlined_call_operand.vmem [shape: f32[8,128], index: 3, kind: input, shape index: {}]   ;;  %s4510_s4 = inlined_call_operand.hbm [shape: f32[16,256], index: 4, kind: input, shape index: {}]   ;;  %s4511_s5 = inlined_call_operand.hbm [shape: bf16[256,256], index: 5, kind: input, shape index: {}]   ;;  %s4512_s6 = inlined_call_operand.vmem [shape: bf16[256,16], index: 6, kind: input, shape index: {}]   ;;  %s4513_s7 = inlined_call_operand.vmem [shape: f32[32,16], index: 7, kind: output, shape index: {}]  }
   0x1   :  { %14 = vsyncpa [#allocation5 + $0x1], 0 }
   0x2   :  { %15 = vsyncpa [#allocation7], 0  ;;  %s3305_s24 = smov 0   ;;  %s3307_s25 = smov 0  }
   0x3   :  { %s3309_s26 = smov 0   ;;  %s3311_s27 = smov 0  }
   0x4 LB: > { %s2663_s28 = sadd.s32 4294967295, %s3246_s27   ;;  %p41_p0 = scmp.ne.s32.totalorder %s3238_s25, %s3234_s24  ;;  %s3246_s27 = sphi %s3311_s27, %s4644_s27   ;;  %s3242_s26 = sphi %s3309_s26, %s4647_s26   ;;  %s3238_s25 = sphi %s3307_s25, %s4646_s25   ;;  %s3234_s24 = sphi %s3305_s24, %s4645_s24  }
   0x5   : > { %p3327_p1 = scmp.eq.s32.totalorder %s2663_s28, 0  ;;  %p2665_p2 = scmp.ge.s32.totalorder %s3246_s27, 1 }
   0x6   : > { %p204_p3 = scmp.lt.s32.totalorder %s3246_s27, 3  ;;  %s3248_s9 = smov [#allocation6]  }
   0x7   : > { %s4549_s29 = scalar_select %p3327_p1, 1, 0 }
   0x8   : > { %p3335_p4 = por %p3327_p1, %p41_p0  ;;  %p3339_p5 = pnand %p2665_p2, %p204_p3 }
   0x9   : > { %s225_s10 = sshll.u32 %s3248_s9, 4  ;;  %s3249_s12 = smov [#allocation8]   ;;  %s226_s10 = int_to_ptr.vmem [resolvable:$true] %s225_s10 }
   0xa   : > { %s4550_s30 = scalar_select %p3335_p4, 1, 0 }
   0xb   : > { %s4551_s8 = scalar_select %p3339_p5, 1, 0 }
   0xc   : > { %p2954_p6 = pneg %p3339_p5  ;;  %s238_s13 = sshll.u32 %s3249_s12, 4  ;;  %s3351_s13 = int_to_ptr.vmem [resolvable:$true] %s238_s13 }
   0xd   : > { %s3122_s16 = scalar_lea.hbm %s4510_s4, 512 }
   0xe   : > { %p3347_p7 = pnand %p2954_p6, %p3327_p1  ;;  %p3123_p8 = scmp.ne.s32.totalorder %s4510_s4, %s3122_s16 }
   0xf   : > { %p3129_p12 = scmp.lt.u32.totalorder %s3122_s16, %s4510_s4 }
  0x10   : > { %p3124_p9 = pneg %p3347_p7 }
  0x12   : > { %p3125_p10 = pnand %p3124_p9, %p3123_p8 }
  0x14   : > { %p3126_p11 = pneg %p3125_p10 }
  0x16   : > { %p3131_p13 = pnand %p3129_p12, %p3126_p11 }
  0x18   : > { %3134 = shalt.err (!%p3131_p13)
}
  0x19   : > { %s3135_s21 = scalar_lea.vmem %s226_s10, 512  ;;  %p3143_p6 = scmp.lt.s32.totalorder %s226_s10, %s226_s10 }
  0x1a   : > { %p3136_p0 = scmp.ne.s32.totalorder %s226_s10, %s3135_s21  ;;  %p3144_p1 = scmp.lt.s32.totalorder %s3135_s21, %s3135_s21 }
  0x1c   : > { %p3138_p2 = pnand %p3136_p0, %p3124_p9  ;;  %p3145_p4 = por %p3144_p1, %p3143_p6 }
  0x1e   : > { %p3139_p3 = pneg %p3138_p2 }
  0x20   : > { %p3146_p5 = pnand %p3145_p4, %p3139_p3 }
  0x22   : > { %3149 = shalt.err (!%p3146_p5)
}
  0x23   : > { %s3250_s22 = smov 256   ;;  %s3251_s23 = smov 16  }
  0x24   : > { %2957 = dma.hbm_to_vmem [thread:$0]  (!%p3347_p7), %s4510_s4, 512, %s226_s10, [#allocation7], %s3250_s22, %s3250_s22, %s3251_s23  }
  0x25   : > { %s3150_s15 = scalar_lea.hbm %s4511_s5, 4096 }
  0x26   : > { %p3151_p8 = scmp.ne.s32.totalorder %s4511_s5, %s3150_s15  ;;  %p3157_p5 = scmp.lt.u32.totalorder %s3150_s15, %s4511_s5 }
  0x28   : > { %p3153_p1 = pnand %p3151_p8, %p3124_p9 }
  0x2a   : > { %p3154_p4 = pneg %p3153_p1 }
  0x2c   : > { %p3159_p10 = pnand %p3157_p5, %p3154_p4 }
  0x2e   : > { %3162 = shalt.err (!%p3159_p10)
}
  0x2f   : > { %s3163_s10 = scalar_lea.vmem %s3351_s13, 4096  ;;  %p3171_p0 = scmp.lt.s32.totalorder %s3351_s13, %s3351_s13 }
  0x30   : > { %p3164_p11 = scmp.ne.s32.totalorder %s3351_s13, %s3163_s10  ;;  %p3172_p2 = scmp.lt.s32.totalorder %s3163_s10, %s3163_s10 }
  0x32   : > { %p3166_p12 = pnand %p3164_p11, %p3124_p9  ;;  %p3173_p3 = por %p3172_p2, %p3171_p0 }
  0x34   : > { %p3167_p13 = pneg %p3166_p12 }
  0x36   : > { %p3174_p6 = pnand %p3173_p3, %p3167_p13 }
  0x38   : > { %3177 = shalt.err (!%p3174_p6)
}
  0x39   : > { %s3252_s20 = smov 128   ;;  %s3253_s21 = smov 8  }
  0x3a   : > { %2960 = dma.hbm_to_vmem [thread:$0]  (!%p3347_p7), %s4511_s5, 4096, %s3351_s13, [#allocation7], %s3252_s20, %s3252_s20, %s3253_s21  }
  0x3b   : > { %s3404_s24 = sadd.s32 1, %s3246_s27   ;;  %s28_s12 = sadd.s32 1, %s3242_s26 }
  0x3c   : > { %s25_s9 = ssub.s32 %s3246_s27, %s3404_s24  ;;  %p35_p8 = scmp.ne.s32.totalorder %s3242_s26, %s3238_s25 }
  0x3d   : > { %p26_p9 = scmp.eq.s32.totalorder %s25_s9, 0  ;;  %p36_p1 = scmp.eq.s32.totalorder %s3246_s27, 0 }
  0x3e   : > { %p2967_p5 = scmp.lt.s32.totalorder %s3246_s27, 2  ;;  %s255_s11 = sand.u32 1, %s3242_s26  }
  0x3f   : > { %s3413_s14 = scalar_select %p26_p9, %s3242_s26, %s28_s12  }
  0x40   : > { %p37_p4 = por %p36_p1, %p35_p8  ;;  %s2747_s15 = sshll.u32 %s3246_s27, 8 }
  0x41   : > { %s2669_s16 = sshll.u32 %s255_s11, 4  ;;  %s3421_s19 = scalar_lea.hbm %s4506_s0, %s2747_s15 }
  0x42   : > { %s259_s13 = scalar_lea.vmem [#allocation4], %s2669_s16  ;;  %p3423_p7 = pnand %p2967_p5, %p37_p4 }
  0x43   : > { %s266_s10 = sshll.u32 %s259_s13, 4  ;;  %s3429_s23 = scalar_lea.sflag [#allocation5], %s255_s11  ;;  %s3427_s10 = int_to_ptr.vmem [resolvable:$true] %s266_s10 }
  0x44   : > { %s3178_s9 = scalar_lea.hbm %s3421_s19, 256  ;;  %p3180_p11 = pneg %p3423_p7 }
  0x45   : > { %p3179_p10 = scmp.ne.s32.totalorder %s3421_s19, %s3178_s9  ;;  %s3183_s16 = scalar_lea.hbm %s4506_s0, 512 }
  0x46   : > { %p3184_p0 = scmp.lt.u32.totalorder %s3421_s19, %s4506_s0  ;;  %p3185_p2 = scmp.lt.u32.totalorder %s3183_s16, %s3178_s9 }
  0x47   : > { %p3181_p12 = pnand %p3180_p11, %p3179_p10  ;;  %p3187_p6 = scmp.lt.u32.totalorder %s3178_s9, %s3421_s19 }
  0x48   : > { %p3186_p3 = por %p3185_p2, %p3184_p0 }
  0x49   : > { %p3182_p13 = pneg %p3181_p12 }
  0x4a   : > { %p3188_p9 = por %p3187_p6, %p3186_p3 }
  0x4c   : > { %p3189_p8 = pnand %p3188_p9, %p3182_p13 }
  0x4e   : > { %3192 = shalt.err (!%p3189_p8)
}
  0x4f   : > { %s3193_s11 = scalar_lea.vmem %s3427_s10, 256  ;;  %s3254_s13 = smov [#allocation4]  }
  0x50   : > { %p3194_p1 = scmp.ne.s32.totalorder %s3427_s10, %s3193_s11  ;;  %s3198_s12 = sshll.u32 %s3254_s13, 4  ;;  %s3199_s12 = int_to_ptr.vmem [resolvable:$false] %s3198_s12 }
  0x51   : > { %s3200_s15 = scalar_lea.vmem %s3199_s12, 512  ;;  %p3201_p10 = scmp.lt.s32.totalorder %s3427_s10, %s3199_s12 }
  0x52   : > { %p3196_p4 = pnand %p3194_p1, %p3180_p11  ;;  %p3202_p12 = scmp.lt.s32.totalorder %s3200_s15, %s3193_s11 }
  0x54   : > { %p3197_p5 = pneg %p3196_p4  ;;  %p3203_p0 = por %p3202_p12, %p3201_p10 }
  0x56   : > { %p3204_p2 = pnand %p3203_p0, %p3197_p5 }
  0x58   : > { %3207 = shalt.err (!%p3204_p2)
}
  0x59   : > { %2964 = dma.hbm_to_vmem [thread:$0]  (!%p3423_p7), %s3421_s19, 256, %s3427_s10, %s3429_s23, %s3252_s20, %s3252_s20, %s3253_s21  }
  0x5a   : > { %p4554_p11 = scmp.ne.s32.totalorder %s4551_s8, 0 }
  0x5c   : > { %278 = sbr.rel (%p4554_p11) target bundleno = 2423 (0x977), region = 48 }
  0x63   : > { %s280_s9 = sand.u32 1, %s3238_s25   ;;  %p4555_p13 = scmp.ne.s32.totalorder %s4550_s30, 0 }
  0x64   : > { %s2673_s16 = sshll.u32 %s280_s9, 4  ;;  %s281_s17 = scalar_lea.sflag [#allocation5], %s280_s9 }
  0x65   : > { %s284_s18 = scalar_lea.vmem [#allocation4], %s2673_s16 }
  0x66   : > { %3225 = dma.done.wait (%p4555_p13), %s281_s17, 256  }
  0x67   : > { %3227 = vsyncadd (%p4555_p13), %s281_s17, 4294967040  ;;  %p4556_p3 = scmp.ne.s32.totalorder %s4549_s29, 0 }
  0x69   : > { %3229 = dma.done.wait (%p4556_p3), [#allocation7], 4608  }
  0x6a   : > { %3231 = vsyncadd (%p4556_p3), [#allocation7], 4294962688  ;;  %v3255_v0 = vmov 0.0   ;;  %vm3256_vm0 = vmmov 0   ;;  %v3257_v1 = vmov 0.0|0.0   ;;  %v331_v2 = vld [vmem:[%s284_s18] sm:$0xff] }
  0x6b   : > { %2808 = vmatprep.subr.mxu0 %v3255_v0  ;;  %2810 = vmatprep.mubr.msk.f32.mxu0 %vm3256_vm0, %v3255_v0  ;;  %v2687_v3 = vld [vmem:[%s284_s18 + $0x8] sm:$0xff]  ;;  %v332_v4 = vmax.f32 %v331_v2, 0.0  ;;  %v409_v6 = vld [vmem:[%s4508_s2] sm:$0xff]  ;;  %v411_v8 = vld [vmem:[%s4508_s2 + $0x10] sm:$0xff]  ;;  %vm335_vm1 = vcmask 64512   ;;  %s2676_s30 = sshll.u32 %s2663_s28, 1 }
  0x6c   : > { %2888 = vmatprep.subr.bf16.mxu1 %v3257_v1  ;;  %2845 = vmatprep.mubr.msk.f32.mxu1 %vm3256_vm0, %v3255_v0  ;;  %v1004_v5 = vmax.f32 %v2687_v3, 0.0  ;;  %v410_v7 = vld [vmem:[%s4508_s2 + $0x8] sm:$0xff]  ;;  %v412_v10 = vld [vmem:[%s4508_s2 + $0x18] sm:$0xff]  ;;  %v334_v12 = vld [vmem:[%s4507_s1] sm:$0xff]  ;;  %p325_p7 = scmp.lt.s32.totalorder %s2676_s30, 3 }
  0x6d   : > { %v2889_v9 = vpack.c.bf16 %v410_v7, %v409_v6  ;;  %v333_v11 = vmin.f32 %v332_v4, 1.0  ;;  %v2892_v14 = vpack.c.bf16 %v412_v10, %v411_v8  ;;  %v413_v15 = vld [vmem:[%s4508_s2 + $0x20] sm:$0xff]  ;;  %v414_v16 = vld [vmem:[%s4508_s2 + $0x28] sm:$0xff]  ;;  %v415_v17 = vld [vmem:[%s4508_s2 + $0x30] sm:$0xff] }
  0x6e   : > { %v1005_v13 = vmin.f32 %v1004_v5, 1.0  ;;  %v416_v18 = vld [vmem:[%s4508_s2 + $0x38] sm:$0xff]  ;;  %v2895_v19 = vpack.c.bf16 %v414_v16, %v413_v15  ;;  %v417_v20 = vld [vmem:[%s4508_s2 + $0x40] sm:$0xff]  ;;  %v418_v21 = vld [vmem:[%s4508_s2 + $0x48] sm:$0xff]  ;;  %s4649_s30 = smov (!%p325_p7, %s2676_s30), 3 }
  0x6f   : > { %2890 = vmatpush3.bf16.msra.mxu1 %v2889_v9  ;;  %2809 = vmatpush3.msra.mxu0 %v333_v11  ;;  %v2898_v22 = vpack.c.bf16 %v416_v18, %v415_v17  ;;  %v419_v23 = vld [vmem:[%s4508_s2 + $0x50] sm:$0xff]  ;;  %v420_v24 = vld [vmem:[%s4508_s2 + $0x58] sm:$0xff]  ;;  %v2901_v25 = vpack.c.bf16 %v418_v21, %v417_v20  ;;  %v421_v26 = vld [vmem:[%s4508_s2 + $0x60] sm:$0xff]  ;;  %s2677_s8 = sshll.u32 %s4649_s30, 3 }
  0x70   : > { %2891 = vmatprep.subr.bf16.mxu1 %v3257_v1  ;;  %2811 = vmatmul.mubr.msk.f32.vlgmr.msra.gmra.mrb[0].mxu0 %vm335_vm1, %v334_v12  ;;  %v422_v27 = vld [vmem:[%s4508_s2 + $0x68] sm:$0xff]  ;;  %v2904_v28 = vpack.c.bf16 %v420_v24, %v419_v23  ;;  %v423_v29 = vld [vmem:[%s4508_s2 + $0x70] sm:$0xff]  ;;  %v424_v30 = vld [vmem:[%s4508_s2 + $0x78] sm:$0xff]  ;;  %s328_s21 = scalar_lea.vmem %s4513_s7, %s2677_s8 }
  0x71   : > { %2848 = vmatprep.subr.mxu0 %v3255_v0  ;;  %2850 = vmatprep.mubr.msk.f32.mxu0 %vm3256_vm0, %v3255_v0  ;;  %v2907_v31 = vpack.c.bf16 %v422_v27, %v421_v26  ;;  %v2910_v32 = vpack.c.bf16 %v424_v30, %v423_v29  ;;  %v3544_v33 = vld [vmem:[#allocation8 + $0x4] ss:$8 sps:$4 sm:$0xff]   ;;  %v1708_v35 = vld [vmem:[#allocation6 + $0x18] sm:$0xff]  ;;  %v3548_v36 = vld [vmem:[#allocation8] ss:$8 sps:$4 sm:$0xff]  }
  0x72   : > { %2849 = vmatpush3.msra.mxu0 %v1005_v13  ;;  %v1706_v34 = vld [vmem:[#allocation6 + $0x8] sm:$0xff]  ;;  %v3550_v38 = vld [vmem:[#allocation8 + $0x14] ss:$8 sps:$4 sm:$0xff]   ;;  %v3553_v41 = vld [vmem:[#allocation8 + $0x10] ss:$8 sps:$4 sm:$0xff]  }
  0x73   : > { %2912 = vmatprep.subr.bf16.mxu0 %v3257_v1  ;;  %2893 = vmatpush3.bf16.msra.mxu1 %v2892_v14  ;;  %v1710_v37 = vpack.c.bf16 %v1708_v35, %v1706_v34  ;;  %v3556_v42 = vld [vmem:[#allocation8 + $0x24] ss:$8 sps:$4 sm:$0xff]   ;;  %v3559_v45 = vld [vmem:[#allocation8 + $0x20] ss:$8 sps:$4 sm:$0xff]   ;;  %v3563_v46 = vld [vmem:[#allocation8 + $0x34] ss:$8 sps:$4 sm:$0xff]  }
  0x74   : > { %2894 = vmatprep.subr.bf16.mxu1 %v3257_v1  ;;  %2851 = vmatmul.mubr.msk.f32.vlgmr.msra.gmra.mrb[2].mxu0 %vm335_vm1, %v334_v12  ;;  %v3567_v47 = vld [vmem:[#allocation8 + $0x30] ss:$8 sps:$4 sm:$0xff]   ;;  %v3571_v48 = vld [vmem:[#allocation8 + $0x44] ss:$8 sps:$4 sm:$0xff]   ;;  %v3575_v49 = vld [vmem:[#allocation8 + $0x40] ss:$8 sps:$4 sm:$0xff]  }
  0x75   : > { %2914 = vmatpush3.bf16.msra.mxu0 %v2889_v9  ;;  %2885 = vmatprep.mubr.msk.f32.mxu0 %vm3256_vm0, %v3255_v0  ;;  %v3579_v50 = vld [vmem:[#allocation8 + $0x54] ss:$8 sps:$4 sm:$0xff]   ;;  %v3583_v51 = vld [vmem:[#allocation8 + $0x50] ss:$8 sps:$4 sm:$0xff]   ;;  %v3587_v52 = vld [vmem:[#allocation8 + $0x64] ss:$8 sps:$4 sm:$0xff]  }
  0x76   : > { %2915 = vmatprep.subr.bf16.mxu0 %v3257_v1  ;;  %v3591_v53 = vld [vmem:[#allocation8 + $0x60] ss:$8 sps:$4 sm:$0xff]   ;;  %v3595_v54 = vld [vmem:[#allocation8 + $0x74] ss:$8 sps:$4 sm:$0xff]   ;;  %v3599_v55 = vld [vmem:[#allocation8 + $0x70] ss:$8 sps:$4 sm:$0xff]  }
  0x77   : > { %2896 = vmatpush3.bf16.msra.mxu1 %v2895_v19  ;;  %v3603_v56 = vld [vmem:[#allocation8 + $0x84] ss:$8 sps:$4 sm:$0xff]   ;;  %v3607_v57 = vld [vmem:[#allocation8 + $0x80] ss:$8 sps:$4 sm:$0xff]   ;;  %v3611_v58 = vld [vmem:[#allocation8 + $0x94] ss:$8 sps:$4 sm:$0xff]  }
  0x78   : > { %2897 = vmatprep.subr.bf16.mxu1 %v3257_v1  ;;  %v3615_v59 = vld [vmem:[#allocation8 + $0x90] ss:$8 sps:$4 sm:$0xff]   ;;  %v3619_v60 = vld [vmem:[#allocation8 + $0xa4] ss:$8 sps:$4 sm:$0xff]   ;;  %v3623_v61 = vld [vmem:[#allocation8 + $0xa0] ss:$8 sps:$4 sm:$0xff]  }
  0x79   : > { %2917 = vmatpush3.bf16.msra.mxu0 %v2892_v14  ;;  %v3627_v62 = vld [vmem:[#allocation8 + $0xb4] ss:$8 sps:$4 sm:$0xff]   ;;  %v3631_v63 = vld [vmem:[#allocation8 + $0xb0] ss:$8 sps:$4 sm:$0xff]   ;;  %v3635_v0 = vld [vmem:[#allocation8 + $0xc4] ss:$8 sps:$4 sm:$0xff]  }
  0x7a   : > { %2918 = vmatprep.subr.bf16.mxu0 %v3257_v1  ;;  %v3643_v2 = vld [vmem:[#allocation8 + $0xd4] ss:$8 sps:$4 sm:$0xff]   ;;  %v3647_v3 = vld [vmem:[#allocation8 + $0xd0] ss:$8 sps:$4 sm:$0xff]   ;;  %v3651_v4 = vld [vmem:[#allocation8 + $0xe4] ss:$8 sps:$4 sm:$0xff]  }
  0x7b   : > { %2899 = vmatpush3.bf16.msra.mxu1 %v2898_v22  ;;  %4557 = vst [vmem:[#allocation11_spill] sm:$0xff] %v3651_v4  ;;  %v3655_v5 = vld [vmem:[#allocation8 + $0xe0] ss:$8 sps:$4 sm:$0xff]   ;;  %v3659_v6 = vld [vmem:[#allocation8 + $0xf4] ss:$8 sps:$4 sm:$0xff]  }
  0x7c   : > { %2900 = vmatprep.subr.bf16.mxu1 %v3257_v1  ;;  %4558 = vst [vmem:[#allocation12_spill] sm:$0xff] %v3655_v5  ;;  %4559 = vst [vmem:[#allocation13_spill] sm:$0xff] %v3659_v6  ;;  %v3663_v7 = vld [vmem:[#allocation8 + $0xf0] ss:$8 sps:$4 sm:$0xff]   ;;  %v1705_v8 = vld [vmem:[#allocation6] sm:$0xff] }
  0x7d   : > { %2920 = vmatpush3.bf16.msra.mxu0 %v2895_v19  ;;  %4560 = vst [vmem:[#allocation14_spill] sm:$0xff] %v3663_v7  ;;  %v1707_v9 = vld [vmem:[#allocation6 + $0x10] sm:$0xff]  ;;  %v495_v12 = vld [vmem:[%s4509_s3] sm:$0xff] }
  0x7e   : > { %2921 = vmatprep.subr.bf16.mxu0 %v3257_v1  ;;  %v1709_v10 = vpack.c.bf16 %v1707_v9, %v1705_v8  ;;  %v3259_v9 = vmov 2475754826  }
  0x7f   : > { %2902 = vmatpush3.bf16.msra.mxu1 %v2901_v25 }
  0x80   : > { %2903 = vmatprep.subr.bf16.mxu1 %v3257_v1 }
  0x81   : > { %2923 = vmatpush3.bf16.msra.mxu0 %v2898_v22 }
  0x82   : > { %2924 = vmatprep.subr.bf16.mxu0 %v3257_v1 }
  0x83   : > { %2905 = vmatpush3.bf16.msra.mxu1 %v2904_v28 }
  0x84   : > { %2906 = vmatprep.subr.bf16.mxu1 %v3257_v1 }
  0x85   : > { %2926 = vmatpush3.bf16.msra.mxu0 %v2901_v25 }
  0x86   : > { %2927 = vmatprep.subr.bf16.mxu0 %v3257_v1 }
  0x87   : > { %2908 = vmatpush3.bf16.msra.mxu1 %v2907_v31 }
  0x88   : > { %2909 = vmatprep.subr.bf16.mxu1 %v3257_v1 }
  0x89   : > { %2929 = vmatpush3.bf16.msra.mxu0 %v2904_v28 }
  0x8a   : > { %2930 = vmatprep.subr.bf16.mxu0 %v3257_v1 }
  0x8b   : > { %2911 = vmatpush3.bf16.msra.mxu1 %v2910_v32 }
  0x8c   : > { %1871 = vmatprep.subr.bf16.mxu1 %v3544_v33 }
  0x8d   : > { %2932 = vmatpush3.bf16.msra.mxu0 %v2907_v31 }
  0x8e   : > { %2933 = vmatprep.subr.bf16.mxu0 %v3257_v1  ;;  %v3639_v1 = vld [vmem:[#allocation8 + $0xc0] ss:$8 sps:$4 sm:$0xff]  }
  0x91   : > { %2935 = vmatpush3.bf16.msra.mxu0 %v2910_v32 }
  0x92   : > { %1936 = vmatprep.subr.bf16.mxu0 %v3544_v33 }
 0x143   : > { %v405_v39 = vpop.f32.mrb[0].mxu0 }
 0x144   : > { %v2812_v40 = vpop.f32.mrb[1].mxu0  ;;  %2846 = vmatmul.mubr.f32.vlgmr.msra.gmra.mrb[0].mxu1 %v405_v39 }
 0x145   : > { %1872 = vmatpush1.bf16.msra.mxu1 %v3548_v36  ;;  %1903 = vmatprep.mubr.bf16.mxu1 %v1710_v37  ;;  %v4522_v40 = vmov 683565275  }
 0x146   : > { %1873 = vmatprep.subr.bf16.mxu1 %v3550_v38 }
 0x147   : > { %v1076_v43 = vpop.f32.mrb[2].mxu0 }
 0x148   : > { %v2852_v44 = vpop.f32.mrb[3].mxu0  ;;  %2886 = vmatmul.mubr.f32.vlgmr.msra.gmra.mrb[4].mxu0 %v1076_v43 }
 0x149   : > { %1874 = vmatpush1.bf16.msra.mxu1 %v3553_v41  ;;  %1937 = vmatpush1.bf16.msra.mxu0 %v3548_v36 }
 0x14a   : > { %1875 = vmatprep.subr.bf16.mxu1 %v3556_v42  ;;  %1938 = vmatprep.subr.bf16.mxu0 %v3550_v38 }
 0x14d   : > { %1876 = vmatpush1.bf16.msra.mxu1 %v3559_v45  ;;  %1939 = vmatpush1.bf16.msra.mxu0 %v3553_v41 }
 0x14e   : > { %1877 = vmatprep.subr.bf16.mxu1 %v3563_v46  ;;  %1940 = vmatprep.subr.bf16.mxu0 %v3556_v42 }
 0x151   : > { %1878 = vmatpush1.bf16.msra.mxu1 %v3567_v47  ;;  %1941 = vmatpush1.bf16.msra.mxu0 %v3559_v45 }
 0x152   : > { %1879 = vmatprep.subr.bf16.mxu1 %v3571_v48  ;;  %1942 = vmatprep.subr.bf16.mxu0 %v3563_v46 }
 0x155   : > { %1880 = vmatpush1.bf16.msra.mxu1 %v3575_v49  ;;  %1943 = vmatpush1.bf16.msra.mxu0 %v3567_v47 }
 0x156   : > { %1881 = vmatprep.subr.bf16.mxu1 %v3579_v50  ;;  %1944 = vmatprep.subr.bf16.mxu0 %v3571_v48 }
 0x159   : > { %1882 = vmatpush1.bf16.msra.mxu1 %v3583_v51  ;;  %1945 = vmatpush1.bf16.msra.mxu0 %v3575_v49 }
 0x15a   : > { %1883 = vmatprep.subr.bf16.mxu1 %v3587_v52  ;;  %1946 = vmatprep.subr.bf16.mxu0 %v3579_v50 }
 0x15d   : > { %1884 = vmatpush1.bf16.msra.mxu1 %v3591_v53  ;;  %1947 = vmatpush1.bf16.msra.mxu0 %v3583_v51 }
 0x15e   : > { %1885 = vmatprep.subr.bf16.mxu1 %v3595_v54  ;;  %1948 = vmatprep.subr.bf16.mxu0 %v3587_v52 }
 0x161   : > { %1886 = vmatpush1.bf16.msra.mxu1 %v3599_v55  ;;  %1949 = vmatpush1.bf16.msra.mxu0 %v3591_v53 }
 0x162   : > { %1887 = vmatprep.subr.bf16.mxu1 %v3603_v56  ;;  %1950 = vmatprep.subr.bf16.mxu0 %v3595_v54 }
 0x165   : > { %1888 = vmatpush1.bf16.msra.mxu1 %v3607_v57  ;;  %1951 = vmatpush1.bf16.msra.mxu0 %v3599_v55 }
 0x166   : > { %1889 = vmatprep.subr.bf16.mxu1 %v3611_v58  ;;  %1952 = vmatprep.subr.bf16.mxu0 %v3603_v56 }
 0x169   : > { %1890 = vmatpush1.bf16.msra.mxu1 %v3615_v59  ;;  %1953 = vmatpush1.bf16.msra.mxu0 %v3607_v57 }
 0x16a   : > { %1891 = vmatprep.subr.bf16.mxu1 %v3619_v60  ;;  %1954 = vmatprep.subr.bf16.mxu0 %v3611_v58 }
 0x16d   : > { %1892 = vmatpush1.bf16.msra.mxu1 %v3623_v61  ;;  %1955 = vmatpush1.bf16.msra.mxu0 %v3615_v59 }
 0x16e   : > { %1893 = vmatprep.subr.bf16.mxu1 %v3627_v62  ;;  %1956 = vmatprep.subr.bf16.mxu0 %v3619_v60 }
 0x171   : > { %1894 = vmatpush1.bf16.msra.mxu1 %v3631_v63  ;;  %1957 = vmatpush1.bf16.msra.mxu0 %v3623_v61 }
 0x172   : > { %1895 = vmatprep.subr.bf16.mxu1 %v3635_v0  ;;  %1958 = vmatprep.subr.bf16.mxu0 %v3627_v62 }
 0x175   : > { %1896 = vmatpush1.bf16.msra.mxu1 %v3639_v1  ;;  %1959 = vmatpush1.bf16.msra.mxu0 %v3631_v63 }
 0x176   : > { %1897 = vmatprep.subr.bf16.mxu1 %v3643_v2  ;;  %1960 = vmatprep.subr.bf16.mxu0 %v3635_v0 }
 0x179   : > { %1898 = vmatpush1.bf16.msra.mxu1 %v3647_v3  ;;  %1961 = vmatpush1.bf16.msra.mxu0 %v3639_v1 }
 0x17a   : > { %1899 = vmatprep.subr.bf16.mxu1 %v3651_v4  ;;  %1962 = vmatprep.subr.bf16.mxu0 %v3643_v2 }
 0x17d   : > { %1900 = vmatpush1.bf16.msra.mxu1 %v3655_v5  ;;  %1963 = vmatpush1.bf16.msra.mxu0 %v3647_v3 }
 0x17e   : > { %1901 = vmatprep.subr.bf16.mxu1 %v3659_v6  ;;  %1964 = vmatprep.subr.bf16.mxu0 %v3651_v4 }
 0x181   : > { %1902 = vmatpush1.bf16.msra.mxu1 %v3663_v7  ;;  %1965 = vmatpush1.bf16.msra.mxu0 %v3655_v5 }
 0x182   : > { %1966 = vmatprep.subr.bf16.mxu0 %v3659_v6  ;;  %2003 = vmatprep.subr.bf16.mxu1 %v3544_v33 }
 0x184   : > { %1904 = vmatmul.mubr.bf16.vlgmr.msra.gmra.mrb[4].mxu1 %v1709_v10 }
 0x185   : > { %1967 = vmatpush1.bf16.msra.mxu0 %v3663_v7  ;;  %2004 = vmatpush1.bf16.msra.mxu1 %v3548_v36 }
 0x186   : > { %2005 = vmatprep.subr.bf16.mxu1 %v3550_v38  ;;  %2070 = vmatprep.subr.bf16.mxu0 %v3544_v33 }
 0x189   : > { %2006 = vmatpush1.bf16.msra.mxu1 %v3553_v41 }
 0x18a   : > { %2007 = vmatprep.subr.bf16.mxu1 %v3556_v42 }
 0x18d   : > { %2008 = vmatpush1.bf16.msra.mxu1 %v3559_v45 }
 0x18e   : > { %2009 = vmatprep.subr.bf16.mxu1 %v3563_v46 }
 0x191   : > { %2010 = vmatpush1.bf16.msra.mxu1 %v3567_v47 }
 0x192   : > { %2011 = vmatprep.subr.bf16.mxu1 %v3571_v48 }
 0x195   : > { %2012 = vmatpush1.bf16.msra.mxu1 %v3575_v49 }
 0x196   : > { %2013 = vmatprep.subr.bf16.mxu1 %v3579_v50 }
 0x199   : > { %2014 = vmatpush1.bf16.msra.mxu1 %v3583_v51 }
 0x19a   : > { %2015 = vmatprep.subr.bf16.mxu1 %v3587_v52 }
 0x19d   : > { %2016 = vmatpush1.bf16.msra.mxu1 %v3591_v53 }
 0x19e   : > { %2017 = vmatprep.subr.bf16.mxu1 %v3595_v54 }
 0x1a1   : > { %2018 = vmatpush1.bf16.msra.mxu1 %v3599_v55 }
 0x1a2   : > { %2019 = vmatprep.subr.bf16.mxu1 %v3603_v56 }
 0x1a5   : > { %2020 = vmatpush1.bf16.msra.mxu1 %v3607_v57 }
 0x1a6   : > { %2021 = vmatprep.subr.bf16.mxu1 %v3611_v58 }
 0x1a9   : > { %2022 = vmatpush1.bf16.msra.mxu1 %v3615_v59 }
 0x1aa   : > { %2023 = vmatprep.subr.bf16.mxu1 %v3619_v60 }
 0x1ad   : > { %2024 = vmatpush1.bf16.msra.mxu1 %v3623_v61 }
 0x1ae   : > { %2025 = vmatprep.subr.bf16.mxu1 %v3627_v62 }
 0x1b1   : > { %2026 = vmatpush1.bf16.msra.mxu1 %v3631_v63 }
 0x1b2   : > { %2027 = vmatprep.subr.bf16.mxu1 %v3635_v0 }
 0x1b5   : > { %2028 = vmatpush1.bf16.msra.mxu1 %v3639_v1 }
 0x1b6   : > { %2029 = vmatprep.subr.bf16.mxu1 %v3643_v2 }
 0x1b9   : > { %2030 = vmatpush1.bf16.msra.mxu1 %v3647_v3 }
 0x1ba   : > { %2031 = vmatprep.subr.bf16.mxu1 %v3651_v4 }
 0x1bd   : > { %2032 = vmatpush1.bf16.msra.mxu1 %v3655_v5 }
 0x1be   : > { %2033 = vmatprep.subr.bf16.mxu1 %v3659_v6 }
 0x1c1   : > { %2034 = vmatpush1.bf16.msra.mxu1 %v3663_v7 }
 0x1c2   : > { %2137 = vmatprep.subr.bf16.mxu1 %v3544_v33 }
 0x217   : > { %v491_v11 = vpop.f32.mrb[0].mxu1 }
 0x218   : > { %v496_v13 = vmul.f32 0.02, %v491_v11  ;;  %v2847_v14 = vpop.f32.mrb[1].mxu1  ;;  %v3260_v11 = vmov 2131351028  }
 0x21a   : > { %v497_v15 = vadd.f32 %v496_v13, %v495_v12  ;;  %v3261_v13 = vmov 2102212464  }
 0x21b   : > { %v1162_v16 = vpop.f32.mrb[4].mxu0 }
 0x21c   : > { %v3709_v17 = vmul.f32 4.053668, %v497_v15  ;;  %v1167_v18 = vmul.f32 0.02, %v1162_v16  ;;  %v2887_v19 = vpop.f32.mrb[5].mxu0 }
 0x21d   : > { %v3262_v15 = vmov 920167782  }
 0x21e   : > { %v4519_v20 = vand.u32 2147483647, %v3709_v17  ;;  %v502_v21 = vand.u32 2139095040, %v3709_v17  ;;  %v1168_v22 = vadd.f32 %v1167_v18, %v495_v12  ;;  %vm501_vm0 = vcmp.lt.s32.totalorder %v3709_v17, 0 }
 0x220   : > { %v503_v23 = vshrl.u32 %v502_v21, 23  ;;  %v506_v24 = vand.u32 8388607, %v4519_v20  ;;  %v3715_v25 = vmul.f32 4.053668, %v1168_v22 }
 0x222   : > { %v2679_v26 = vadd.s32 4294967169, %v503_v23  ;;  %v1173_v27 = vand.u32 2139095040, %v3715_v25  ;;  %v507_v29 = vor.u32 8388608, %v506_v24  ;;  %v4518_v31 = vand.u32 2147483647, %v3715_v25 }
 0x223   : > { %v3263_v24 = vmov 1326507024  }
 0x224   : > { %v509_v28 = vadd.s32 1, %v2679_v26  ;;  %v1174_v30 = vshrl.u32 %v1173_v27, 23  ;;  %v3719_v37 = vshll.u32 %v507_v29, 8  ;;  %v1177_v44 = vand.u32 8388607, %v4518_v31 }
 0x226   : > { %vm510_vm2 = vcmp.gt.s32.totalorder %v509_v28, 0  ;;  %v2689_v33 = vadd.s32 4294967169, %v1174_v30  ;;  %v1178_v5 = vor.u32 8388608, %v1177_v44 }
 0x227   : > { %v511_v32 = vsel %vm510_vm2, %v509_v28, 0  ;;  %vm1172_vm2 = vcmp.lt.s32.totalorder %v3715_v25, 0 }
 0x228   : > { %v512_v34 = vshrl.u32 %v511_v32, 5  ;;  %v513_v35 = vand.u32 31, %v511_v32  ;;  %v1180_v8 = vadd.s32 1, %v2689_v33 }
 0x22a   : > { %v514_v39 = vsub.s32 32, %v513_v35  ;;  %v516_v43 = vshll.u32 %v4522_v40, %v513_v35  ;;  %v519_v10 = vshll.u32 %v3259_v9, %v513_v35  ;;  %v522_v12 = vshll.u32 %v3260_v11, %v513_v35 }
 0x22b   : > { %v525_v14 = vshll.u32 %v3261_v13, %v513_v35  ;;  %v528_v16 = vshll.u32 %v3262_v15, %v513_v35  ;;  %vm531_vm3 = vcmp.lt.s32.totalorder %v512_v34, 1  ;;  %vm533_vm4 = vcmp.lt.s32.totalorder %v512_v34, 3 }
 0x22c   : > { %v517_v18 = vshrl.u32 %v3259_v9, %v514_v39  ;;  %v520_v19 = vshrl.u32 %v3260_v11, %v514_v39  ;;  %v523_v21 = vshrl.u32 %v3261_v13, %v514_v39  ;;  %v515_v22 = vshrl.u32 %v4522_v40, %v514_v39 }
 0x22d   : > { %v526_v23 = vshrl.u32 %v3262_v15, %v514_v39  ;;  %v529_v26 = vshrl.u32 %v3263_v24, %v514_v39  ;;  %vm1181_vm5 = vcmp.gt.s32.totalorder %v1180_v8, 0  ;;  %vm534_vm6 = vcmp.lt.s32.totalorder %v512_v34, 4 }
 0x22e   : > { %v518_v27 = vor.u32 %v517_v18, %v516_v43  ;;  %v521_v28 = vor.u32 %v520_v19, %v519_v10  ;;  %v524_v29 = vor.u32 %v523_v21, %v522_v12  ;;  %v1182_v33 = vsel %vm1181_vm5, %v1180_v8, 0 }
 0x22f   : > { %v527_v30 = vor.u32 %v526_v23, %v525_v14  ;;  %v530_v32 = vor.u32 %v529_v26, %v528_v16  ;;  %vm532_vm7 = vcmp.lt.s32.totalorder %v512_v34, 2  ;;  %v1184_v12 = vand.u32 31, %v1182_v33 }
 0x230   : > { %v535_v35 = vsel %vm531_vm3, %v515_v22, %v518_v27  ;;  %v536_v31 = vsel %vm534_vm6, %v524_v29, 2102212464  ;;  %v539_v20 = vsel %vm531_vm3, %v518_v27, %v521_v28  ;;  %v543_v7 = vsel %vm531_vm3, %v521_v28, %v524_v29 }
 0x231   : > { %v537_v40 = vsel %vm533_vm4, %v521_v28, %v536_v31  ;;  %v540_v6 = vsel %vm534_vm6, %v527_v30, 920167782  ;;  %v544_v39 = vsel %vm534_vm6, %v530_v32, 1326507024  ;;  %v1183_v31 = vshrl.u32 %v1182_v33, 5 }
 0x232   : > { %v541_v43 = vsel %vm533_vm4, %v524_v29, %v540_v6  ;;  %v545_v10 = vsel %vm533_vm4, %v527_v30, %v544_v39  ;;  %v538_v14 = vsel %vm532_vm7, %v535_v35, %v537_v40  ;;  %v1185_v44 = vsub.s32 32, %v1184_v12 }
 0x233   : > { %v542_v8 = vsel %vm532_vm7, %v539_v20, %v541_v43  ;;  %v546_v16 = vsel %vm532_vm7, %v543_v7, %v545_v10  ;;  %v1218_v23 = vshll.u32 %v1178_v5, 8  ;;  %v554_v6 = vmul.u32 %v3719_v37, %v538_v14 }
 0x234   : > { %v3732_v18 = vmul.u32.u64.low %v3719_v37, %v546_v16  ;;  %v3733_v19 = vmul.u32.u64.high %v3719_v37, %v546_v16, %v3732_v18  ;;  %v3736_v21 = vmul.u32.u64.low %v3719_v37, %v542_v8  ;;  %v3737_v22 = vmul.u32.u64.high %v3719_v37, %v542_v8, %v3736_v21 }
 0x235   : > { %v4561_v34 = vmov 683565275   ;;  %v1190_v27 = vshll.u32 %v3259_v9, %v1184_v12  ;;  %v1193_v40 = vshll.u32 %v3260_v11, %v1184_v12  ;;  %v1188_v20 = vshrl.u32 %v3259_v9, %v1185_v44 }
 0x236   : > { %v1187_v26 = vshll.u32 %v4561_v34, %v1184_v12  ;;  %v1191_v7 = vshrl.u32 %v3260_v11, %v1185_v44  ;;  %v1194_v28 = vshrl.u32 %v3261_v13, %v1185_v44  ;;  %v1196_v29 = vshll.u32 %v3261_v13, %v1184_v12 }
 0x237   : > { %vm556_vm8 = vc.u32 %v3733_v19, %v3736_v21  ;;  %v557_v30 = vadd.s32 1, %v3737_v22  ;;  %v1197_v32 = vshrl.u32 %v3262_v15, %v1185_v44  ;;  %v1199_v35 = vshll.u32 %v3262_v15, %v1184_v12 }
 0x238   : > { %v1189_v33 = vor.u32 %v1188_v20, %v1187_v26  ;;  %v1192_v39 = vor.u32 %v1191_v7, %v1190_v27  ;;  %v1195_v5 = vor.u32 %v1194_v28, %v1193_v40  ;;  %v1200_v43 = vshrl.u32 %v3263_v24, %v1185_v44 }
 0x239   : > { %v558_v37 = vsel %vm556_vm8, %v557_v30, %v3737_v22  ;;  %v1198_v10 = vor.u32 %v1197_v32, %v1196_v29  ;;  %vm1202_vm9 = vcmp.lt.s32.totalorder %v1183_v31, 1  ;;  %vm1205_vm10 = vcmp.lt.s32.totalorder %v1183_v31, 4 }
 0x23a   : > { %v559_v9 = vadd.s32 %v558_v37, %v554_v6  ;;  %v1201_v11 = vor.u32 %v1200_v43, %v1199_v35  ;;  %vm1204_vm11 = vcmp.lt.s32.totalorder %v1183_v31, 3  ;;  %v1207_v13 = vsel %vm1205_vm10, %v1195_v5, 2102212464 }
 0x23b   : > { %v1186_v14 = vshrl.u32 %v4561_v34, %v1185_v44  ;;  %v1210_v8 = vsel %vm1202_vm9, %v1189_v33, %v1192_v39  ;;  %v1211_v16 = vsel %vm1205_vm10, %v1198_v10, 920167782  ;;  %v1214_v18 = vsel %vm1202_vm9, %v1192_v39, %v1195_v5 }
 0x23c   : > { %v560_v4 = vadd.s32 536870912, %v559_v9  ;;  %vm1203_vm12 = vcmp.lt.s32.totalorder %v1183_v31, 2  ;;  %v1212_v15 = vsel %vm1204_vm11, %v1195_v5, %v1211_v16  ;;  %v1215_v12 = vsel %vm1205_vm10, %v1201_v11, 1326507024 }
 0x23d   : > { %v1206_v26 = vsel %vm1202_vm9, %v1186_v14, %v1189_v33  ;;  %v1208_v24 = vsel %vm1204_vm11, %v1192_v39, %v1207_v13  ;;  %v1213_v27 = vsel %vm1203_vm12, %v1210_v8, %v1212_v15  ;;  %v1216_v22 = vsel %vm1204_vm11, %v1198_v10, %v1215_v12 }
 0x23e   : > { %v561_v40 = vshrl.u32 %v560_v4, 30  ;;  %v1217_v20 = vsel %vm1203_vm12, %v1214_v18, %v1216_v22  ;;  %v3747_v7 = vmul.u32.u64.low %v1218_v23, %v1213_v27  ;;  %v3748_v6 = vmul.u32.u64.high %v1218_v23, %v1213_v27, %v3747_v7 }
 0x23f   : > { %v3750_v28 = vmul.u32.u64.low %v1218_v23, %v1217_v20  ;;  %v3751_v29 = vmul.u32.u64.high %v1218_v23, %v1217_v20, %v3750_v28  ;;  %v1209_v34 = vsel %vm1203_vm12, %v1206_v26, %v1208_v24  ;;  %vm591_vm10 = vweird.f32 %v3709_v17 }
 0x240   : > { %v562_v44 = vshll.u32 %v561_v40, 30  ;;  %v1228_v32 = vadd.s32 1, %v3748_v6  ;;  %v1225_v31 = vmul.u32 %v1218_v23, %v1209_v34  ;;  %vm1262_vm12 = vweird.f32 %v3715_v25 }
 0x241   : > { %vm1227_vm13 = vc.u32 %v3751_v29, %v3747_v7 }
 0x242   : > { %v563_v30 = vsub.s32 %v559_v9, %v562_v44  ;;  %v1229_v33 = vsel %vm1227_vm13, %v1228_v32, %v3748_v6  ;;  %v555_v9 = vadd.s32 %v3736_v21, %v3733_v19  ;;  %v585_v21 = vsub.s32 4, %v561_v40 }
 0x243   : > { %v1230_v39 = vadd.s32 %v1229_v33, %v1225_v31 }
 0x244   : > { %v565_v35 = vsub.s32 0, %v563_v30 }
 0x245   : > { %v1231_v5 = vadd.s32 536870912, %v1230_v39 }
 0x246   : > { %v2680_v4 = vmin.u32 %v565_v35, %v563_v30 }
 0x247   : > { %v1232_v37 = vshrl.u32 %v1231_v5, 30 }
 0x248   : > { %v567_v43 = vclz %v2680_v4 }
 0x249   : > { %v1233_v11 = vshll.u32 %v1232_v37, 30 }
 0x24a   : > { %v2681_v10 = vadd.s32 4294967294, %v567_v43 }
 0x24b   : > { %v1234_v14 = vsub.s32 %v1230_v39, %v1233_v11 }
 0x24c   : > { %vm2682_vm14 = vcmp.lt.s32.totalorder %v2681_v10, 0 }
 0x24d   : > { %v570_v13 = vsel %vm2682_vm14, 0, %v2681_v10  ;;  %v1236_v16 = vsub.s32 0, %v1234_v14 }
 0x24e   : > { %v571_v8 = vsub.s32 32, %v570_v13  ;;  %v575_v23 = vsub.s32 4294967266, %v570_v13  ;;  %v572_v18 = vshll.u32 %v563_v30, %v570_v13  ;;  %v1226_v30 = vadd.s32 %v3747_v7, %v3751_v29 }
 0x24f   : > { %v2690_v26 = vmin.u32 %v1236_v16, %v1234_v14  ;;  %v4562_v13 = vand.u32 2147483647, %v3709_v17 }
 0x250   : > { %v573_v15 = vshrl.u32 %v555_v9, %v571_v8  ;;  %v576_v12 = vadd.s32 127, %v575_v23  ;;  %v586_v8 = vsel %vm501_vm0, %v585_v21, %v561_v40 }
 0x251   : > { %v1238_v22 = vclz %v2690_v26  ;;  %vm500_vm1 = vcmp.le.f32.partialorder %v4562_v13, 0.7853982 }
 0x252   : > { %v574_v24 = vor.u32 %v573_v15, %v572_v18  ;;  %v577_v27 = vshll.u32 %v576_v12, 23  ;;  %v588_v7 = vsel %vm500_vm1, 0, %v586_v8  ;;  %v1256_v15 = vsub.s32 4, %v1232_v37 }
 0x253   : > { %v2691_v6 = vadd.s32 4294967294, %v1238_v22  ;;  %v3264_v22 = vmov 1966171168   ;;  %v592_v40 = vand.u32 3, %v588_v7 }
 0x254   : > { %v578_v20 = vor.u32 4788187, %v577_v27  ;;  %v581_v44 = vcvt.s32.f32 %v574_v24  ;;  %v695_v24 = vadd.s32 3, %v588_v7  ;;  %v1257_v27 = vsel %vm1172_vm2, %v1256_v15, %v1232_v37 }
 0x255   : > { %vm2692_vm15 = vcmp.lt.s32.totalorder %v2691_v6, 0  ;;  %vm593_vm4 = vcmp.lt.s32.totalorder %v592_v40, 2  ;;  %vm597_vm5 = vcmp.eq.s32.totalorder %v592_v40, 2  ;;  %vm594_vm7 = vcmp.eq.s32.totalorder %v592_v40, 0 }
 0x256   : > { %v579_v28 = vand.u32 2147483647, %v578_v20  ;;  %v1241_v31 = vsel %vm2692_vm15, 0, %v2691_v6  ;;  %v710_v20 = vunpack.c.l.s4 %v3264_v22  ;;  %v712_v6 = vlaneseq }
 0x257   : > { %v3758_v34 = vpop.f32.mrb[4].mxu1  ;;  %v1242_v33 = vsub.s32 32, %v1241_v31  ;;  %v1246_v39 = vsub.s32 4294967266, %v1241_v31  ;;  %v1243_v43 = vshll.u32 %v1234_v14, %v1241_v31 }
 0x258   : > { %v3760_v32 = vpop.f32.mrb[5].mxu1  ;;  %v582_v19 = vmul.f32 %v581_v44, %v579_v28  ;;  %v696_v44 = vand.u32 3, %v695_v24 }
 0x259   : > { %v3762_v35 = vpop.f32.mrb[6].mxu1  ;;  %v1244_v10 = vshrl.u32 %v1226_v30, %v1242_v33  ;;  %v1247_v11 = vadd.s32 127, %v1246_v39  ;;  %v711_v39 = vunpack.c.0.s8 %v710_v20 }
 0x25a   : > { %v3765_v4 = vpop.f32.mrb[7].mxu1  ;;  %v583_v5 = vxor.u32 2147483648, %v582_v19  ;;  %vm701_vm6 = vcmp.eq.s32.totalorder %v696_v44, 2  ;;  %vm698_vm8 = vcmp.eq.s32.totalorder %v696_v44, 0  ;;  %vm697_vm9 = vcmp.lt.s32.totalorder %v696_v44, 2 }
 0x25b   : > { %v1245_v16 = vor.u32 %v1244_v10, %v1243_v43  ;;  %v1248_v18 = vshll.u32 %v1247_v11, 23 }
 0x25c   : > { %v584_v9 = vsel %vm501_vm0, %v583_v5, %v582_v19  ;;  %v4563_v19 = vand.u32 2147483647, %v3715_v25  ;;  %v713_v5 = vshrl.u32 %v712_v6, 7 }
 0x25d   : > { %v587_v23 = vsel %vm500_vm1, %v3709_v17, %v584_v9  ;;  %v1249_v29 = vor.u32 4788187, %v1248_v18  ;;  %v1252_v26 = vcvt.s32.f32 %v1245_v16 }
 0x25e   : > { %3082 = vcosq.f32 %v587_v23  ;;  %vm1171_vm3 = vcmp.le.f32.partialorder %v4563_v19, 0.7853982  ;;  %v3779_v22 = vsub.s32 0, %v713_v5  ;;  %v3781_v20 = vsub.s32 1, %v713_v5 }
 0x25f   : > { %3084 = vsinq.f32 %v587_v23  ;;  %v1250_v12 = vand.u32 2147483647, %v1249_v29  ;;  %v1259_v31 = vsel %vm1171_vm3, 0, %v1257_v27  ;;  %v3777_v29 = vsub.s32 %v711_v39, %v713_v5 }
 0x260   : > { %v1366_v10 = vadd.s32 3, %v1259_v31  ;;  %v1263_v8 = vand.u32 3, %v1259_v31 }
 0x261   : > { %v1253_v14 = vmul.f32 %v1252_v26, %v1250_v12 }
 0x262   : > { %v1367_v15 = vand.u32 3, %v1366_v10  ;;  %vm1264_vm11 = vcmp.lt.s32.totalorder %v1263_v8, 2  ;;  %vm1265_vm13 = vcmp.eq.s32.totalorder %v1263_v8, 0  ;;  %vm1268_vm14 = vcmp.eq.s32.totalorder %v1263_v8, 2 }
 0x263   : > { %v1254_v28 = vxor.u32 2147483648, %v1253_v14 }
 0x264   : > { %vm1368_vm15 = vcmp.lt.s32.totalorder %v1367_v15, 2  ;;  %vm1369_vm0 = vcmp.eq.s32.totalorder %v1367_v15, 0  ;;  %vm1372_vm1 = vcmp.eq.s32.totalorder %v1367_v15, 2 }
 0x265   : > { %v1255_v21 = vsel %vm1172_vm2, %v1254_v28, %v1253_v14  ;;  %vm2574_vm2 = vcmask 130048  }
 0x266   : > { %v1258_v33 = vsel %vm1171_vm3, %v3715_v25, %v1255_v21 }
 0x267   : > { %3086 = vcosq.f32 %v1258_v33 }
 0x268   : > { %v3083_v30 = vpop.eup %3082  ;;  %3088 = vsinq.f32 %v1258_v33 }
 0x269   : > { %v3085_v43 = vpop.eup %3084  ;;  %v598_v37 = vxor.u32 2147483648, %v3083_v30 }
 0x26a   : > { %v595_v11 = vxor.u32 2147483648, %v3085_v43 }
 0x26b   : > { %v599_v13 = vsel %vm597_vm5, %v598_v37, %v3085_v43  ;;  %v703_v9 = vsel %vm701_vm6, %v598_v37, %v3085_v43 }
 0x26c   : > { %v596_v23 = vsel %vm594_vm7, %v3083_v30, %v595_v11  ;;  %v700_v16 = vsel %vm698_vm8, %v3083_v30, %v595_v11 }
 0x26d   : > { %v600_v18 = vsel %vm593_vm4, %v596_v23, %v599_v13  ;;  %v704_v7 = vsel %vm697_vm9, %v700_v16, %v703_v9 }
 0x26e   : > { %v601_v12 = vsel %vm591_vm10, nan, %v600_v18  ;;  %v705_v26 = vsel %vm591_vm10, nan, %v704_v7 }
 0x26f   : > { %v707_v24 = vcombine.low %v601_v12, %v601_v12  ;;  %v757_v14 = vsub.f32 0.0, %v705_v26  ;;  %v708_v27 = vcombine.high %v601_v12, %v601_v12 }
 0x271   : > { %v715_v6 = vrot.slane %v707_v24, %v3777_v29  ;;  %v760_v28 = vcombine.low %v757_v14, %v705_v26  ;;  %v3786_v17 = vrot.slane %v708_v27, %v3777_v29  ;;  %v761_v40 = vcombine.high %v757_v14, %v705_v26  ;;  %v3087_v44 = vpop.eup %3086 }
 0x272   : > { %v3089_v33 = vpop.eup %3088  ;;  %v1269_v39 = vxor.u32 2147483648, %v3087_v44 }
 0x273   : > { %v731_v19 = vrot.slane %v715_v6, %v3777_v29  ;;  %v768_v21 = vrot.slane %v760_v28, %v3777_v29  ;;  %v723_v31 = vcombine.high %v715_v6, %v715_v6  ;;  %v3792_v30 = vrot.slane %v3786_v17, %v3777_v29 }
 0x274   : > { %v3795_v5 = vrot.slane %v761_v40, %v3777_v29  ;;  %v724_v43 = vcombine.high %v3786_v17, %v3786_v17  ;;  %v1266_v13 = vxor.u32 2147483648, %v3089_v33  ;;  %v1270_v9 = vsel %vm1268_vm14, %v1269_v39, %v3089_v33 }
 0x275   : > { %v784_v37 = vrot.slane %v768_v21, %v3777_v29  ;;  %v813_v10 = vrot.slane %v731_v19, %v3779_v22  ;;  %v817_v11 = vrot.slane %v731_v19, %v3781_v20  ;;  %v1374_v23 = vsel %vm1372_vm1, %v1269_v39, %v3089_v33 }
 0x276   : > { %v3804_v16 = vrot.slane %v723_v31, %v3777_v29  ;;  %v776_v18 = vcombine.high %v768_v21, %v768_v21  ;;  %v1267_v14 = vsel %vm1265_vm13, %v3087_v44, %v1266_v13  ;;  %v1371_v27 = vsel %vm1369_vm0, %v3087_v44, %v1266_v13 }
 0x277   : > { %v913_v7 = vrot.slane %v784_v37, %v3781_v20  ;;  %v1918_v12 = vmul.f32 %v3758_v34, %v813_v10  ;;  %v909_v26 = vrot.slane %v784_v37, %v3779_v22  ;;  %v1919_v24 = vmul.f32 %v3760_v32, %v817_v11 }
 0x278   : > { %v3813_v6 = vrot.slane %v776_v18, %v3777_v29  ;;  %v1271_v31 = vsel %vm1264_vm11, %v1267_v14, %v1270_v9  ;;  %v1375_v33 = vsel %vm1368_vm15, %v1371_v27, %v1374_v23  ;;  %v3839_v9 = vcombine.high %v731_v19, %v731_v19 }
 0x279   : > { %v1927_v40 = vmul.f32 %v3758_v34, %v913_v7  ;;  %v1926_v21 = vmul.f32 %v3760_v32, %v909_v26  ;;  %v3823_v39 = vsel %vm1262_vm12, nan, %v1271_v31  ;;  %v1376_v44 = vsel %vm1262_vm12, nan, %v1375_v33 }
 0x27a   : > { %v1378_v8 = vcombine.low %v3823_v39, %v3823_v39  ;;  %v1428_v15 = vsub.f32 0.0, %v1376_v44  ;;  %v3841_v25 = vcombine.high %v784_v37, %v784_v37  ;;  %v3845_v23 = vcombine.high %v3804_v16, %v3804_v16 }
 0x27b   : > { %v3831_v34 = vadd.f32 %v1926_v21, %v1918_v12  ;;  %v3833_v32 = vadd.f32 %v1927_v40, %v1919_v24  ;;  %v3850_v12 = vcombine.high %v3813_v6, %v3813_v6  ;;  %v3854_v26 = vrot.slane %v3795_v5, %v3777_v29 }
 0x27c   : > { %v1386_v18 = vrot.slane %v1378_v8, %v3777_v29  ;;  %v1431_v7 = vcombine.low %v1428_v15, %v1376_v44 }
 0x27e   : > { %v1402_v27 = vrot.slane %v1386_v18, %v3777_v29  ;;  %v1439_v40 = vrot.slane %v1431_v7, %v3777_v29  ;;  %v1394_v21 = vcombine.high %v1386_v18, %v1386_v18 }
 0x280   : > { %v1455_v37 = vrot.slane %v1439_v40, %v3777_v29  ;;  %v1484_v7 = vrot.slane %v1402_v27, %v3779_v22  ;;  %v1488_v18 = vrot.slane %v1402_v27, %v3781_v20  ;;  %v3880_v31 = vrot.slane %v1394_v21, %v3777_v29 }
 0x281   : > { %v1447_v19 = vcombine.high %v1439_v40, %v1439_v40  ;;  %v3882_v33 = vcombine.high %v1402_v27, %v1402_v27  ;;  %v1379_v27 = vcombine.high %v3823_v39, %v3823_v39 }
 0x282   : > { %v1584_v14 = vrot.slane %v1455_v37, %v3781_v20  ;;  %v1920_v13 = vmul.f32 %v3762_v35, %v1484_v7  ;;  %v1580_v11 = vrot.slane %v1455_v37, %v3779_v22  ;;  %v1921_v10 = vmul.f32 %v3765_v4, %v1488_v18 }
 0x283   : > { %v3893_v21 = vrot.slane %v1447_v19, %v3777_v29  ;;  %v1496_v40 = vrot.slane %v3880_v31, %v3781_v20  ;;  %v3899_v8 = vcombine.high %v1455_v37, %v1455_v37  ;;  %v1432_v37 = vcombine.high %v1428_v15, %v1376_v44  ;;  %v4195_v44 = vld [vmem:[#allocation8 + $0xf4] ss:$8 sps:$4 sm:$0xff]  }
 0x284   : > { %v1929_v24 = vmul.f32 %v3762_v35, %v1584_v14  ;;  %v1928_v28 = vmul.f32 %v3765_v4, %v1580_v11  ;;  %v3917_v11 = vcombine.high %v3880_v31, %v3880_v31  ;;  %v1393_v17 = vrot.slane %v1379_v27, %v3777_v29 }
 0x285   : > { %v1592_v19 = vrot.slane %v3893_v21, %v3781_v20  ;;  %v3921_v18 = vcombine.high %v3893_v21, %v3893_v21  ;;  %v3967_v15 = vcombine.high %v3854_v26, %v3854_v26  ;;  %v4586_v7 = vrot.slane %v3841_v25, %v3781_v20 }
 0x286   : > { %v1932_v14 = vadd.f32 %v1928_v28, %v1920_v13  ;;  %v1933_v4 = vadd.f32 %v1929_v24, %v1921_v10  ;;  %v3931_v28 = vrot.slane %v724_v43, %v3777_v29  ;;  %v1446_v43 = vrot.slane %v1432_v37, %v3777_v29 }
 0x287   : > { %v1395_v37 = vcombine.high %v1393_v17, %v1393_v17  ;;  %4566 = vst [vmem:[#allocation17_spill] sm:$0xff] %v3967_v15 }
 0x288   : > { %v1934_v10 = vpack.c.bf16 %v1932_v14, %v3831_v34  ;;  %v1935_v13 = vpack.c.bf16 %v1933_v4, %v3833_v32  ;;  %v777_v34 = vcombine.high %v3795_v5, %v3795_v5  ;;  %v3953_v14 = vcombine.high %v3792_v30, %v3792_v30 }
 0x289   : > { %v3956_v4 = vrot.slane %v1393_v17, %v3777_v29  ;;  %v3959_v27 = vrot.slane %v1446_v43, %v3777_v29 }
 0x28a   : > { %1968 = vmatprep.mubr.bf16.mxu0 %v1935_v13  ;;  %4564 = vst [vmem:[#allocation15_spill] sm:$0xff] %v3953_v14  ;;  %v1448_v13 = vcombine.high %v1446_v43, %v1446_v43  ;;  %v3963_v5 = vrot.slane %v777_v34, %v3777_v29 }
 0x28b   : > { %1969 = vmatmul.mubr.bf16.vlgmr.msra.gmra.mrb[8].mxu0 %v1934_v10  ;;  %v3998_v34 = vcombine.high %v3956_v4, %v3956_v4  ;;  %v4002_v10 = vcombine.high %v3959_v27, %v3959_v27 }
 0x28c   : > { %2071 = vmatpush1.bf16.msra.mxu0 %v3548_v36  ;;  %4565 = vst [vmem:[#allocation16_spill] sm:$0xff] %v3963_v5  ;;  %v3990_v17 = vrot.slane %v1448_v13, %v3777_v29  ;;  %v4024_v13 = vcombine.high %v3931_v28, %v3931_v28  ;;  %v4028_v43 = vcombine.high %v3963_v5, %v3963_v5 }
 0x28d   : > { %2072 = vmatprep.subr.bf16.mxu0 %v3550_v38  ;;  %v3987_v38 = vrot.slane %v1395_v37, %v3777_v29  ;;  %4569 = vst [vmem:[#allocation20_spill] sm:$0xff] %v3998_v34  ;;  %4570 = vst [vmem:[#allocation21_spill] sm:$0xff] %v4002_v10  ;;  %v4186_v29 = vld [vmem:[#allocation8 + $0xd0] ss:$8 sps:$4 sm:$0xff]   ;;  %v4189_v37 = vld [vmem:[#allocation8 + $0xe4] ss:$8 sps:$4 sm:$0xff]   ;;  %v4585_v36 = vrot.slane %v3839_v9, %v3779_v22  ;;  %v4589_v10 = vrot.slane %v3882_v33, %v3779_v22 }
 0x28e   : > { %4568 = vst [vmem:[#allocation19_spill] sm:$0xff] %v3990_v17  ;;  %4571 = vst [vmem:[#allocation22_spill] sm:$0xff] %v4024_v13 }
 0x28f   : > { %4567 = vst [vmem:[#allocation18_spill] sm:$0xff] %v3987_v38  ;;  %4572 = vst [vmem:[#allocation23_spill] sm:$0xff] %v4028_v43  ;;  %v4588_v43 = vrot.slane %v3841_v25, %v3779_v22  ;;  %v4592_v25 = vrot.slane %v3899_v8, %v3779_v22 }
 0x290   : > { %2073 = vmatpush1.bf16.msra.mxu0 %v3553_v41  ;;  %v4036_v41 = vcombine.high %v3990_v17, %v3990_v17 }
 0x291   : > { %2074 = vmatprep.subr.bf16.mxu0 %v3556_v42  ;;  %v4032_v42 = vcombine.high %v3987_v38, %v3987_v38 }
 0x292   : > { %4574 = vst [vmem:[#allocation25_spill] sm:$0xff] %v4036_v41  ;;  %v4587_v41 = vrot.slane %v3839_v9, %v3781_v20  ;;  %v4591_v9 = vrot.slane %v3882_v33, %v3781_v20  ;;  %v4254_v33 = vld [vmem:[#allocation8 + $0xf0] ss:$8 sps:$4 sm:$0xff]  }
 0x293   : > { %4573 = vst [vmem:[#allocation24_spill] sm:$0xff] %v4032_v42 }
 0x294   : > { %2075 = vmatpush1.bf16.msra.mxu0 %v3559_v45  ;;  %v4192_v45 = vld [vmem:[#allocation8 + $0xe0] ss:$8 sps:$4 sm:$0xff]  }
 0x295   : > { %2076 = vmatprep.subr.bf16.mxu0 %v3563_v46  ;;  %v4575_v46 = vld [vmem:[#allocation11_spill] sm:$0xff] }
 0x298   : > { %2077 = vmatpush1.bf16.msra.mxu0 %v3567_v47  ;;  %v4576_v47 = vld [vmem:[#allocation12_spill] sm:$0xff] }
 0x299   : > { %2078 = vmatprep.subr.bf16.mxu0 %v3571_v48  ;;  %v4577_v48 = vld [vmem:[#allocation13_spill] sm:$0xff] }
 0x29c   : > { %2079 = vmatpush1.bf16.msra.mxu0 %v3575_v49  ;;  %v4578_v49 = vld [vmem:[#allocation14_spill] sm:$0xff] }
 0x29d   : > { %2080 = vmatprep.subr.bf16.mxu0 %v3579_v50  ;;  %v4081_v50 = vld [vmem:[#allocation8 + $0x4] ss:$8 sps:$4 sm:$0xff]  }
 0x2a0   : > { %2081 = vmatpush1.bf16.msra.mxu0 %v3583_v51 }
 0x2a1   : > { %2082 = vmatprep.subr.bf16.mxu0 %v3587_v52  ;;  %v4579_v52 = vrot.slane %v3804_v16, %v3779_v22 }
 0x2a4   : > { %2083 = vmatpush1.bf16.msra.mxu0 %v3591_v53 }
 0x2a5   : > { %2084 = vmatprep.subr.bf16.mxu0 %v3595_v54  ;;  %v4580_v54 = vrot.slane %v3813_v6, %v3781_v20 }
 0x2a8   : > { %2085 = vmatpush1.bf16.msra.mxu0 %v3599_v55 }
 0x2a9   : > { %2086 = vmatprep.subr.bf16.mxu0 %v3603_v56 }
 0x2ac   : > { %2087 = vmatpush1.bf16.msra.mxu0 %v3607_v57  ;;  %v4581_v57 = vrot.slane %v3804_v16, %v3781_v20 }
 0x2ad   : > { %2088 = vmatprep.subr.bf16.mxu0 %v3611_v58 }
 0x2b0   : > { %2089 = vmatpush1.bf16.msra.mxu0 %v3615_v59  ;;  %v4582_v59 = vrot.slane %v3813_v6, %v3779_v22  ;;  %v4584_v6 = vrot.slane %v3893_v21, %v3779_v22  ;;  %v4117_v21 = vld [vmem:[#allocation8 + $0x24] ss:$8 sps:$4 sm:$0xff]  }
 0x2b1   : > { %2090 = vmatprep.subr.bf16.mxu0 %v3619_v60 }
 0x2b4   : > { %2091 = vmatpush1.bf16.msra.mxu0 %v3623_v61 }
 0x2b5   : > { %2092 = vmatprep.subr.bf16.mxu0 %v3627_v62  ;;  %v4583_v62 = vrot.slane %v3880_v31, %v3779_v22  ;;  %v4114_v31 = vld [vmem:[#allocation8 + $0x10] ss:$8 sps:$4 sm:$0xff]  }
 0x2b8   : > { %2093 = vmatpush1.bf16.msra.mxu0 %v3631_v63 }
 0x2b9   : > { %2094 = vmatprep.subr.bf16.mxu0 %v3635_v0 }
 0x2bc   : > { %2095 = vmatpush1.bf16.msra.mxu0 %v3639_v1 }
 0x2bd   : > { %2096 = vmatprep.subr.bf16.mxu0 %v3643_v2 }
 0x2c0   : > { %2097 = vmatpush1.bf16.msra.mxu0 %v3647_v3 }
 0x2c1   : > { %2098 = vmatprep.subr.bf16.mxu0 %v4575_v46 }
 0x2c4   : > { %2099 = vmatpush1.bf16.msra.mxu0 %v4576_v47 }
 0x2c5   : > { %2100 = vmatprep.subr.bf16.mxu0 %v4577_v48 }
 0x2c8   : > { %2101 = vmatpush1.bf16.msra.mxu0 %v4578_v49 }
 0x2c9   : > { %2204 = vmatprep.subr.bf16.mxu0 %v4081_v50 }
 0x35e   : > { %v1970_v51 = vpop.f32.mrb[8].mxu0 }
 0x35f   : > { %v1984_v53 = vmul.f32 %v1970_v51, %v4579_v52  ;;  %v1994_v55 = vmul.f32 %v1970_v51, %v4580_v54  ;;  %v1972_v56 = vpop.f32.mrb[9].mxu0  ;;  %v4108_v54 = vld [vmem:[#allocation8] ss:$8 sps:$4 sm:$0xff]  }
 0x360   : > { %v1985_v58 = vmul.f32 %v1972_v56, %v4581_v57  ;;  %v1993_v60 = vmul.f32 %v1972_v56, %v4582_v59  ;;  %v1974_v61 = vpop.f32.mrb[10].mxu0  ;;  %v4129_v56 = vld [vmem:[#allocation8 + $0x44] ss:$8 sps:$4 sm:$0xff]   ;;  %v4132_v57 = vld [vmem:[#allocation8 + $0x40] ss:$8 sps:$4 sm:$0xff]  }
 0x361   : > { %v1986_v63 = vmul.f32 %v1974_v61, %v4583_v62  ;;  %v1996_v0 = vmul.f32 %v1974_v61, %v1592_v19  ;;  %v1976_v1 = vpop.f32.mrb[11].mxu0  ;;  %v4111_v19 = vld [vmem:[#allocation8 + $0x14] ss:$8 sps:$4 sm:$0xff]   ;;  %v4138_v59 = vld [vmem:[#allocation8 + $0x50] ss:$8 sps:$4 sm:$0xff]  }
 0x362   : > { %v1997_v2 = vadd.f32 %v1993_v60, %v1984_v53  ;;  %v1998_v3 = vadd.f32 %v1994_v55, %v1985_v58  ;;  %v1987_v16 = vmul.f32 %v1976_v1, %v1496_v40  ;;  %v1995_v46 = vmul.f32 %v1976_v1, %v4584_v6  ;;  %v4120_v40 = vld [vmem:[#allocation8 + $0x20] ss:$8 sps:$4 sm:$0xff]   ;;  %v4123_v53 = vld [vmem:[#allocation8 + $0x34] ss:$8 sps:$4 sm:$0xff]   ;;  %v4126_v55 = vld [vmem:[#allocation8 + $0x30] ss:$8 sps:$4 sm:$0xff]  }
 0x363   : > { %v4135_v58 = vld [vmem:[#allocation8 + $0x54] ss:$8 sps:$4 sm:$0xff]   ;;  %v4141_v60 = vld [vmem:[#allocation8 + $0x64] ss:$8 sps:$4 sm:$0xff]   ;;  %v4144_v61 = vld [vmem:[#allocation8 + $0x60] ss:$8 sps:$4 sm:$0xff]  }
 0x364   : > { %v1999_v47 = vadd.f32 %v1995_v46, %v1986_v63  ;;  %v2000_v48 = vadd.f32 %v1996_v0, %v1987_v16  ;;  %v4147_v62 = vld [vmem:[#allocation8 + $0x74] ss:$8 sps:$4 sm:$0xff]   ;;  %v4150_v63 = vld [vmem:[#allocation8 + $0x70] ss:$8 sps:$4 sm:$0xff]   ;;  %v4153_v0 = vld [vmem:[#allocation8 + $0x84] ss:$8 sps:$4 sm:$0xff]  }
 0x365   : > { %v4156_v1 = vld [vmem:[#allocation8 + $0x80] ss:$8 sps:$4 sm:$0xff]   ;;  %v4165_v16 = vld [vmem:[#allocation8 + $0xa4] ss:$8 sps:$4 sm:$0xff]   ;;  %v4171_v46 = vld [vmem:[#allocation8 + $0xb4] ss:$8 sps:$4 sm:$0xff]  }
 0x366   : > { %v2001_v51 = vpack.c.bf16 %v1999_v47, %v1997_v2  ;;  %v2002_v52 = vpack.c.bf16 %v2000_v48, %v1998_v3  ;;  %v4159_v2 = vld [vmem:[#allocation8 + $0x94] ss:$8 sps:$4 sm:$0xff]   ;;  %v4162_v3 = vld [vmem:[#allocation8 + $0x90] ss:$8 sps:$4 sm:$0xff]   ;;  %v4168_v6 = vld [vmem:[#allocation8 + $0xa0] ss:$8 sps:$4 sm:$0xff]  }
 0x367   : > { %v4174_v47 = vld [vmem:[#allocation8 + $0xb0] ss:$8 sps:$4 sm:$0xff]   ;;  %v4177_v48 = vld [vmem:[#allocation8 + $0xc4] ss:$8 sps:$4 sm:$0xff]  }
 0x368   : > { %2035 = vmatprep.mubr.bf16.mxu1 %v2002_v52  ;;  %v4183_v52 = vld [vmem:[#allocation8 + $0xd4] ss:$8 sps:$4 sm:$0xff]  }
 0x369   : > { %2036 = vmatmul.mubr.bf16.vlgmr.msra.gmra.mrb[8].mxu1 %v2001_v51  ;;  %v4180_v51 = vld [vmem:[#allocation8 + $0xc0] ss:$8 sps:$4 sm:$0xff]  }
 0x36a   : > { %2138 = vmatpush1.bf16.msra.mxu1 %v4108_v54 }
 0x36b   : > { %2139 = vmatprep.subr.bf16.mxu1 %v4111_v19 }
 0x36e   : > { %2140 = vmatpush1.bf16.msra.mxu1 %v4114_v31 }
 0x36f   : > { %2141 = vmatprep.subr.bf16.mxu1 %v4117_v21 }
 0x372   : > { %2142 = vmatpush1.bf16.msra.mxu1 %v4120_v40 }
 0x373   : > { %2143 = vmatprep.subr.bf16.mxu1 %v4123_v53 }
 0x376   : > { %2144 = vmatpush1.bf16.msra.mxu1 %v4126_v55 }
 0x377   : > { %2145 = vmatprep.subr.bf16.mxu1 %v4129_v56 }
 0x37a   : > { %2146 = vmatpush1.bf16.msra.mxu1 %v4132_v57 }
 0x37b   : > { %2147 = vmatprep.subr.bf16.mxu1 %v4135_v58 }
 0x37e   : > { %2148 = vmatpush1.bf16.msra.mxu1 %v4138_v59 }
 0x37f   : > { %2149 = vmatprep.subr.bf16.mxu1 %v4141_v60 }
 0x382   : > { %2150 = vmatpush1.bf16.msra.mxu1 %v4144_v61 }
 0x383   : > { %2151 = vmatprep.subr.bf16.mxu1 %v4147_v62 }
 0x386   : > { %2152 = vmatpush1.bf16.msra.mxu1 %v4150_v63 }
 0x387   : > { %2153 = vmatprep.subr.bf16.mxu1 %v4153_v0 }
 0x38a   : > { %2154 = vmatpush1.bf16.msra.mxu1 %v4156_v1 }
 0x38b   : > { %2155 = vmatprep.subr.bf16.mxu1 %v4159_v2 }
 0x38e   : > { %2156 = vmatpush1.bf16.msra.mxu1 %v4162_v3 }
 0x38f   : > { %2157 = vmatprep.subr.bf16.mxu1 %v4165_v16 }
 0x392   : > { %2158 = vmatpush1.bf16.msra.mxu1 %v4168_v6 }
 0x393   : > { %2159 = vmatprep.subr.bf16.mxu1 %v4171_v46 }
 0x396   : > { %2160 = vmatpush1.bf16.msra.mxu1 %v4174_v47 }
 0x397   : > { %2161 = vmatprep.subr.bf16.mxu1 %v4177_v48 }
 0x39a   : > { %2162 = vmatpush1.bf16.msra.mxu1 %v4180_v51 }
 0x39b   : > { %2163 = vmatprep.subr.bf16.mxu1 %v4183_v52 }
 0x39e   : > { %2164 = vmatpush1.bf16.msra.mxu1 %v4186_v29 }
 0x39f   : > { %2165 = vmatprep.subr.bf16.mxu1 %v4189_v37 }
 0x3a2   : > { %2166 = vmatpush1.bf16.msra.mxu1 %v4192_v45 }
 0x3a3   : > { %2167 = vmatprep.subr.bf16.mxu1 %v4195_v44 }
 0x3a6   : > { %2168 = vmatpush1.bf16.msra.mxu1 %v4578_v49 }
 0x3a7   : > { %2271 = vmatprep.subr.bf16.mxu1 %v4081_v50 }
 0x43c   : > { %v2037_v32 = vpop.f32.mrb[8].mxu1 }
 0x43d   : > { %v2051_v39 = vmul.f32 %v2037_v32, %v4585_v36  ;;  %v2061_v24 = vmul.f32 %v2037_v32, %v4586_v7  ;;  %v2039_v35 = vpop.f32.mrb[9].mxu1  ;;  %v4590_v36 = vrot.slane %v3899_v8, %v3781_v20 }
 0x43e   : > { %v2052_v42 = vmul.f32 %v2039_v35, %v4587_v41  ;;  %v2060_v49 = vmul.f32 %v2039_v35, %v4588_v43  ;;  %v2041_v13 = vpop.f32.mrb[10].mxu1 }
 0x43f   : > { %v2053_v34 = vmul.f32 %v2041_v13, %v4589_v10  ;;  %v2063_v15 = vmul.f32 %v2041_v13, %v4590_v36  ;;  %v2043_v14 = vpop.f32.mrb[11].mxu1  ;;  %v4595_v10 = vrot.slane %v3845_v23, %v3781_v20 }
 0x440   : > { %v2064_v7 = vadd.f32 %v2060_v49, %v2051_v39  ;;  %v2065_v32 = vadd.f32 %v2061_v24, %v2052_v42  ;;  %v2054_v41 = vmul.f32 %v2043_v14, %v4591_v9  ;;  %v2062_v35 = vmul.f32 %v2043_v14, %v4592_v25 }
 0x441   : > { %v4593_v24 = vrot.slane %v3845_v23, %v3779_v22  ;;  %v4597_v42 = vrot.slane %v3917_v11, %v3779_v22  ;;  %v4598_v49 = vrot.slane %v3921_v18, %v3781_v20  ;;  %v4599_v23 = vrot.slane %v3917_v11, %v3781_v20 }
 0x442   : > { %v2066_v43 = vadd.f32 %v2062_v35, %v2053_v34  ;;  %v2067_v17 = vadd.f32 %v2063_v15, %v2054_v41  ;;  %v4594_v15 = vrot.slane %v3850_v12, %v3781_v20  ;;  %v4596_v34 = vrot.slane %v3850_v12, %v3779_v22 }
 0x443   : > { %v4600_v12 = vrot.slane %v3921_v18, %v3779_v22  ;;  %v4601_v11 = vrot.slane %v3792_v30, %v3779_v22 }
 0x444   : > { %v2068_v38 = vpack.c.bf16 %v2066_v43, %v2064_v7  ;;  %v2069_v5 = vpack.c.bf16 %v2067_v17, %v2065_v32 }
 0x446   : > { %2102 = vmatprep.mubr.bf16.mxu0 %v2069_v5 }
 0x447   : > { %2103 = vmatmul.mubr.bf16.vlgmr.msra.gmra.mrb[12].mxu0 %v2068_v38 }
 0x448   : > { %2205 = vmatpush1.bf16.msra.mxu0 %v4108_v54 }
 0x449   : > { %2206 = vmatprep.subr.bf16.mxu0 %v4111_v19 }
 0x44c   : > { %2207 = vmatpush1.bf16.msra.mxu0 %v4114_v31 }
 0x44d   : > { %2208 = vmatprep.subr.bf16.mxu0 %v4117_v21 }
 0x450   : > { %2209 = vmatpush1.bf16.msra.mxu0 %v4120_v40 }
 0x451   : > { %2210 = vmatprep.subr.bf16.mxu0 %v4123_v53 }
 0x454   : > { %2211 = vmatpush1.bf16.msra.mxu0 %v4126_v55 }
 0x455   : > { %2212 = vmatprep.subr.bf16.mxu0 %v4129_v56 }
 0x458   : > { %2213 = vmatpush1.bf16.msra.mxu0 %v4132_v57 }
 0x459   : > { %2214 = vmatprep.subr.bf16.mxu0 %v4135_v58 }
 0x45c   : > { %2215 = vmatpush1.bf16.msra.mxu0 %v4138_v59 }
 0x45d   : > { %2216 = vmatprep.subr.bf16.mxu0 %v4141_v60 }
 0x460   : > { %2217 = vmatpush1.bf16.msra.mxu0 %v4144_v61 }
 0x461   : > { %2218 = vmatprep.subr.bf16.mxu0 %v4147_v62 }
 0x464   : > { %2219 = vmatpush1.bf16.msra.mxu0 %v4150_v63 }
 0x465   : > { %2220 = vmatprep.subr.bf16.mxu0 %v4153_v0 }
 0x468   : > { %2221 = vmatpush1.bf16.msra.mxu0 %v4156_v1 }
 0x469   : > { %2222 = vmatprep.subr.bf16.mxu0 %v4159_v2 }
 0x46c   : > { %2223 = vmatpush1.bf16.msra.mxu0 %v4162_v3 }
 0x46d   : > { %2224 = vmatprep.subr.bf16.mxu0 %v4165_v16 }
 0x470   : > { %2225 = vmatpush1.bf16.msra.mxu0 %v4168_v6 }
 0x471   : > { %2226 = vmatprep.subr.bf16.mxu0 %v4171_v46 }
 0x474   : > { %2227 = vmatpush1.bf16.msra.mxu0 %v4174_v47 }
 0x475   : > { %2228 = vmatprep.subr.bf16.mxu0 %v4177_v48 }
 0x478   : > { %2229 = vmatpush1.bf16.msra.mxu0 %v4180_v51 }
 0x479   : > { %2230 = vmatprep.subr.bf16.mxu0 %v4183_v52 }
 0x47c   : > { %2231 = vmatpush1.bf16.msra.mxu0 %v4186_v29 }
 0x47d   : > { %2232 = vmatprep.subr.bf16.mxu0 %v4189_v37 }
 0x480   : > { %2233 = vmatpush1.bf16.msra.mxu0 %v4192_v45 }
 0x481   : > { %2234 = vmatprep.subr.bf16.mxu0 %v4195_v44 }
 0x484   : > { %2235 = vmatpush1.bf16.msra.mxu0 %v4254_v33 }
 0x485   : > { %2338 = vmatprep.subr.bf16.mxu0 %v4081_v50 }
 0x51a   : > { %v2104_v8 = vpop.f32.mrb[12].mxu0 }
 0x51b   : > { %v2118_v39 = vmul.f32 %v2104_v8, %v4593_v24  ;;  %v2128_v14 = vmul.f32 %v2104_v8, %v4594_v15  ;;  %v2106_v5 = vpop.f32.mrb[13].mxu0  ;;  %v4602_v15 = vrot.slane %v3854_v26, %v3781_v20 }
 0x51c   : > { %v2119_v17 = vmul.f32 %v2106_v5, %v4595_v10  ;;  %v2127_v38 = vmul.f32 %v2106_v5, %v4596_v34  ;;  %v2108_v13 = vpop.f32.mrb[14].mxu0  ;;  %v4603_v10 = vrot.slane %v3792_v30, %v3781_v20  ;;  %v4604_v34 = vrot.slane %v3854_v26, %v3779_v22 }
 0x51d   : > { %v2120_v50 = vmul.f32 %v2108_v13, %v4597_v42  ;;  %v2130_v36 = vmul.f32 %v2108_v13, %v4598_v49  ;;  %v2110_v7 = vpop.f32.mrb[15].mxu0  ;;  %v4605_v42 = vrot.slane %v3956_v4, %v3779_v22  ;;  %v4606_v49 = vrot.slane %v3959_v27, %v3781_v20 }
 0x51e   : > { %v2131_v32 = vadd.f32 %v2127_v38, %v2118_v39  ;;  %v2132_v9 = vadd.f32 %v2128_v14, %v2119_v17  ;;  %v2121_v41 = vmul.f32 %v2110_v7, %v4599_v23  ;;  %v2129_v25 = vmul.f32 %v2110_v7, %v4600_v12 }
 0x51f   : > { %v4607_v30 = vrot.slane %v3956_v4, %v3781_v20  ;;  %v4608_v26 = vrot.slane %v3959_v27, %v3779_v22  ;;  %v4609_v27 = vrot.slane %v3931_v28, %v3779_v22 }
 0x520   : > { %v2133_v35 = vadd.f32 %v2129_v25, %v2120_v50  ;;  %v2134_v43 = vadd.f32 %v2130_v36, %v2121_v41 }
 0x522   : > { %v2135_v8 = vpack.c.bf16 %v2133_v35, %v2131_v32  ;;  %v2136_v24 = vpack.c.bf16 %v2134_v43, %v2132_v9 }
 0x524   : > { %2169 = vmatprep.mubr.bf16.mxu1 %v2136_v24  ;;  %v3072_v24 = vld [vmem:[%s4512_s6 + $0x58] sm:$0xff]  }
 0x525   : > { %2170 = vmatmul.mubr.bf16.vlgmr.msra.gmra.mrb[12].mxu1 %v2135_v8  ;;  %v3071_v8 = vld [vmem:[%s4512_s6 + $0x10] sm:$0xff]  }
 0x526   : > { %2272 = vmatpush1.bf16.msra.mxu1 %v4108_v54 }
 0x527   : > { %2273 = vmatprep.subr.bf16.mxu1 %v4111_v19 }
 0x52a   : > { %2274 = vmatpush1.bf16.msra.mxu1 %v4114_v31 }
 0x52b   : > { %2275 = vmatprep.subr.bf16.mxu1 %v4117_v21 }
 0x52e   : > { %2276 = vmatpush1.bf16.msra.mxu1 %v4120_v40 }
 0x52f   : > { %2277 = vmatprep.subr.bf16.mxu1 %v4123_v53 }
 0x532   : > { %2278 = vmatpush1.bf16.msra.mxu1 %v4126_v55 }
 0x533   : > { %2279 = vmatprep.subr.bf16.mxu1 %v4129_v56 }
 0x536   : > { %2280 = vmatpush1.bf16.msra.mxu1 %v4132_v57 }
 0x537   : > { %2281 = vmatprep.subr.bf16.mxu1 %v4135_v58 }
 0x53a   : > { %2282 = vmatpush1.bf16.msra.mxu1 %v4138_v59 }
 0x53b   : > { %2283 = vmatprep.subr.bf16.mxu1 %v4141_v60 }
 0x53e   : > { %2284 = vmatpush1.bf16.msra.mxu1 %v4144_v61 }
 0x53f   : > { %2285 = vmatprep.subr.bf16.mxu1 %v4147_v62 }
 0x542   : > { %2286 = vmatpush1.bf16.msra.mxu1 %v4150_v63 }
 0x543   : > { %2287 = vmatprep.subr.bf16.mxu1 %v4153_v0 }
 0x546   : > { %2288 = vmatpush1.bf16.msra.mxu1 %v4156_v1 }
 0x547   : > { %2289 = vmatprep.subr.bf16.mxu1 %v4159_v2 }
 0x54a   : > { %2290 = vmatpush1.bf16.msra.mxu1 %v4162_v3 }
 0x54b   : > { %2291 = vmatprep.subr.bf16.mxu1 %v4165_v16 }
 0x54e   : > { %2292 = vmatpush1.bf16.msra.mxu1 %v4168_v6 }
 0x54f   : > { %2293 = vmatprep.subr.bf16.mxu1 %v4171_v46 }
 0x552   : > { %2294 = vmatpush1.bf16.msra.mxu1 %v4174_v47 }
 0x553   : > { %2295 = vmatprep.subr.bf16.mxu1 %v4177_v48 }
 0x556   : > { %2296 = vmatpush1.bf16.msra.mxu1 %v4180_v51 }
 0x557   : > { %2297 = vmatprep.subr.bf16.mxu1 %v4183_v52 }
 0x55a   : > { %2298 = vmatpush1.bf16.msra.mxu1 %v4186_v29 }
 0x55b   : > { %2299 = vmatprep.subr.bf16.mxu1 %v4189_v37 }
 0x55e   : > { %2300 = vmatpush1.bf16.msra.mxu1 %v4192_v45 }
 0x55f   : > { %2301 = vmatprep.subr.bf16.mxu1 %v4195_v44 }
 0x562   : > { %2302 = vmatpush1.bf16.msra.mxu1 %v4254_v33 }
 0x5f8   : > { %v2171_v18 = vpop.f32.mrb[12].mxu1 }
 0x5f9   : > { %v2185_v39 = vmul.f32 %v2171_v18, %v4601_v11  ;;  %v2195_v14 = vmul.f32 %v2171_v18, %v4602_v15  ;;  %v2173_v5 = vpop.f32.mrb[13].mxu1  ;;  %v3073_v18 = vld [vmem:[%s4512_s6 + $0x18] sm:$0xff]   ;;  %v3074_v11 = vld [vmem:[%s4512_s6 + $0x60] sm:$0xff]   ;;  %v3076_v15 = vld [vmem:[%s4512_s6 + $0x68] sm:$0xff]  }
 0x5fa   : > { %v2186_v17 = vmul.f32 %v2173_v5, %v4603_v10  ;;  %v2194_v38 = vmul.f32 %v2173_v5, %v4604_v34  ;;  %v2175_v13 = vpop.f32.mrb[14].mxu1  ;;  %v4620_v5 = vld [vmem:[#allocation15_spill] sm:$0xff]  ;;  %v4622_v34 = vld [vmem:[#allocation17_spill] sm:$0xff] }
 0x5fb   : > { %v2187_v50 = vmul.f32 %v2175_v13, %v4605_v42  ;;  %v2197_v36 = vmul.f32 %v2175_v13, %v4606_v49  ;;  %v2177_v7 = vpop.f32.mrb[15].mxu1  ;;  %v4621_v10 = vrot.slane %v4620_v5, %v3779_v22 }
 0x5fc   : > { %v2198_v32 = vadd.f32 %v2194_v38, %v2185_v39  ;;  %v2199_v9 = vadd.f32 %v2195_v14, %v2186_v17  ;;  %v2188_v23 = vmul.f32 %v2177_v7, %v4607_v30  ;;  %v2196_v41 = vmul.f32 %v2177_v7, %v4608_v26  ;;  %v3075_v39 = vld [vmem:[%s4512_s6 + $0x20] sm:$0xff]   ;;  %v4628_v26 = vld [vmem:[#allocation21_spill] sm:$0xff] }
 0x5fd   : > { %v4623_v38 = vrot.slane %v4622_v34, %v3781_v20 }
 0x5fe   : > { %v2200_v12 = vadd.f32 %v2196_v41, %v2187_v50  ;;  %v2201_v25 = vadd.f32 %v2197_v36, %v2188_v23  ;;  %v4624_v50 = vrot.slane %v4620_v5, %v3781_v20  ;;  %v4625_v36 = vrot.slane %v4622_v34, %v3779_v22 }
 0x5ff   : > { %v4629_v41 = vrot.slane %v4628_v26, %v3781_v20 }
 0x600   : > { %v2202_v35 = vpack.c.bf16 %v2200_v12, %v2198_v32  ;;  %v2203_v43 = vpack.c.bf16 %v2201_v25, %v2199_v9  ;;  %v4626_v9 = vld [vmem:[#allocation20_spill] sm:$0xff] }
 0x601   : > { %v4627_v30 = vrot.slane %v4626_v9, %v3779_v22 }
 0x602   : > { %2236 = vmatprep.mubr.bf16.mxu0 %v2203_v43 }
 0x603   : > { %2237 = vmatmul.mubr.bf16.vlgmr.msra.gmra.mrb[16].mxu0 %v2202_v35 }
 0x604   : > { %2339 = vmatpush1.bf16.msra.mxu0 %v4108_v54 }
 0x605   : > { %2340 = vmatprep.subr.bf16.mxu0 %v4111_v19  ;;  %v4610_v19 = vld [vmem:[#allocation16_spill] sm:$0xff] }
 0x608   : > { %2341 = vmatpush1.bf16.msra.mxu0 %v4114_v31  ;;  %v4611_v31 = vrot.slane %v4610_v19, %v3781_v20 }
 0x609   : > { %2342 = vmatprep.subr.bf16.mxu0 %v4117_v21 }
 0x60c   : > { %2343 = vmatpush1.bf16.msra.mxu0 %v4120_v40 }
 0x60d   : > { %2344 = vmatprep.subr.bf16.mxu0 %v4123_v53 }
 0x610   : > { %2345 = vmatpush1.bf16.msra.mxu0 %v4126_v55  ;;  %v4614_v55 = vld [vmem:[#allocation18_spill] sm:$0xff] }
 0x611   : > { %2346 = vmatprep.subr.bf16.mxu0 %v4129_v56  ;;  %v4615_v56 = vrot.slane %v4614_v55, %v3779_v22 }
 0x614   : > { %2347 = vmatpush1.bf16.msra.mxu0 %v4132_v57 }
 0x615   : > { %2348 = vmatprep.subr.bf16.mxu0 %v4135_v58  ;;  %v4616_v58 = vld [vmem:[#allocation19_spill] sm:$0xff] }
 0x618   : > { %2349 = vmatpush1.bf16.msra.mxu0 %v4138_v59  ;;  %v4617_v59 = vrot.slane %v4616_v58, %v3781_v20 }
 0x619   : > { %2350 = vmatprep.subr.bf16.mxu0 %v4141_v60 }
 0x61c   : > { %2351 = vmatpush1.bf16.msra.mxu0 %v4144_v61 }
 0x61d   : > { %2352 = vmatprep.subr.bf16.mxu0 %v4147_v62 }
 0x620   : > { %2353 = vmatpush1.bf16.msra.mxu0 %v4150_v63 }
 0x621   : > { %2354 = vmatprep.subr.bf16.mxu0 %v4153_v0 }
 0x624   : > { %2355 = vmatpush1.bf16.msra.mxu0 %v4156_v1  ;;  %v4619_v1 = vrot.slane %v4616_v58, %v3779_v22 }
 0x625   : > { %2356 = vmatprep.subr.bf16.mxu0 %v4159_v2 }
 0x628   : > { %2357 = vmatpush1.bf16.msra.mxu0 %v4162_v3 }
 0x629   : > { %2358 = vmatprep.subr.bf16.mxu0 %v4165_v16 }
 0x62c   : > { %2359 = vmatpush1.bf16.msra.mxu0 %v4168_v6 }
 0x62d   : > { %2360 = vmatprep.subr.bf16.mxu0 %v4171_v46 }
 0x630   : > { %2361 = vmatpush1.bf16.msra.mxu0 %v4174_v47  ;;  %v3066_v47 = vld [vmem:[%s4512_s6 + $0x40] sm:$0xff]  }
 0x631   : > { %2362 = vmatprep.subr.bf16.mxu0 %v4177_v48  ;;  %v3067_v48 = vld [vmem:[%s4512_s6] sm:$0xff]   ;;  %2786 = vmatprep.subr.bf16.mxu1 %v3066_v47  ;;  %v4640_v47 = vld [vmem:[#allocation25_spill] sm:$0xff] }
 0x634   : > { %2363 = vmatpush1.bf16.msra.mxu0 %v4180_v51  ;;  %v3068_v51 = vld [vmem:[%s4512_s6 + $0x48] sm:$0xff]  }
 0x635   : > { %2364 = vmatprep.subr.bf16.mxu0 %v4183_v52  ;;  %v3069_v52 = vld [vmem:[%s4512_s6 + $0x8] sm:$0xff]  }
 0x638   : > { %2365 = vmatpush1.bf16.msra.mxu0 %v4186_v29  ;;  %v4612_v29 = vrot.slane %v3931_v28, %v3781_v20  ;;  %v4618_v28 = vrot.slane %v4614_v55, %v3781_v20  ;;  %v3081_v55 = vld [vmem:[%s4512_s6 + $0x38] sm:$0xff]  }
 0x639   : > { %2366 = vmatprep.subr.bf16.mxu0 %v4189_v37 }
 0x63c   : > { %2367 = vmatpush1.bf16.msra.mxu0 %v4192_v45  ;;  %v4613_v45 = vrot.slane %v4610_v19, %v3779_v22 }
 0x63d   : > { %2368 = vmatprep.subr.bf16.mxu0 %v4195_v44 }
 0x640   : > { %2369 = vmatpush1.bf16.msra.mxu0 %v4254_v33  ;;  %v3070_v33 = vld [vmem:[%s4512_s6 + $0x50] sm:$0xff]  }
 0x6d6   : > { %v2238_v4 = vpop.f32.mrb[16].mxu0 }
 0x6d7   : > { %v2252_v54 = vmul.f32 %v2238_v4, %v4609_v27  ;;  %v2262_v21 = vmul.f32 %v2238_v4, %v4611_v31  ;;  %v2240_v40 = vpop.f32.mrb[17].mxu0  ;;  %v4630_v4 = vrot.slane %v4626_v9, %v3781_v20 }
 0x6d8   : > { %v2253_v37 = vmul.f32 %v2240_v40, %v4612_v29  ;;  %v2261_v44 = vmul.f32 %v2240_v40, %v4613_v45  ;;  %v2242_v53 = vpop.f32.mrb[18].mxu0  ;;  %v3078_v45 = vld [vmem:[%s4512_s6 + $0x70] sm:$0xff]  }
 0x6d9   : > { %v2254_v57 = vmul.f32 %v2242_v53, %v4615_v56  ;;  %v2264_v60 = vmul.f32 %v2242_v53, %v4617_v59  ;;  %v2244_v61 = vpop.f32.mrb[19].mxu0  ;;  %v3080_v53 = vld [vmem:[%s4512_s6 + $0x78] sm:$0xff]  }
 0x6da   : > { %v2265_v62 = vadd.f32 %v2261_v44, %v2252_v54  ;;  %v2266_v63 = vadd.f32 %v2262_v21, %v2253_v37  ;;  %v2255_v0 = vmul.f32 %v2244_v61, %v4618_v28  ;;  %v2263_v2 = vmul.f32 %v2244_v61, %v4619_v1  ;;  %v3077_v37 = vld [vmem:[%s4512_s6 + $0x28] sm:$0xff]   ;;  %v3079_v44 = vld [vmem:[%s4512_s6 + $0x30] sm:$0xff]  }
 0x6db   : > { %v4631_v54 = vrot.slane %v4628_v26, %v3779_v22 }
 0x6dc   : > { %v2267_v3 = vadd.f32 %v2263_v2, %v2254_v57  ;;  %v2268_v16 = vadd.f32 %v2264_v60, %v2255_v0  ;;  %v4632_v57 = vld [vmem:[#allocation22_spill] sm:$0xff]  ;;  %v4634_v60 = vld [vmem:[#allocation23_spill] sm:$0xff] }
 0x6dd   : > { %v4633_v58 = vrot.slane %v4632_v57, %v3779_v22  ;;  %v4635_v61 = vrot.slane %v4634_v60, %v3781_v20  ;;  %v4636_v28 = vrot.slane %v4632_v57, %v3781_v20  ;;  %v4637_v1 = vrot.slane %v4634_v60, %v3779_v22 }
 0x6de   : > { %v2269_v6 = vpack.c.bf16 %v2267_v3, %v2265_v62  ;;  %v2270_v46 = vpack.c.bf16 %v2268_v16, %v2266_v63  ;;  %v4638_v16 = vld [vmem:[#allocation24_spill] sm:$0xff] }
 0x6e0   : > { %2303 = vmatprep.mubr.bf16.mxu1 %v2270_v46 }
 0x6e1   : > { %2304 = vmatmul.mubr.bf16.vlgmr.msra.gmra.mrb[16].mxu1 %v2269_v6  ;;  %v4639_v6 = vrot.slane %v4638_v16, %v3779_v22 }
 0x6e2   : > { %2787 = vmatpush3.bf16.msra.mxu1 %v3067_v48  ;;  %v4641_v48 = vrot.slane %v4640_v47, %v3781_v20 }
 0x6e3   : > { %2788 = vmatprep.subr.bf16.mxu1 %v3068_v51 }
 0x6e6   : > { %2789 = vmatpush3.bf16.msra.mxu1 %v3069_v52 }
 0x6e7   : > { %2790 = vmatprep.subr.bf16.mxu1 %v3070_v33 }
 0x6ea   : > { %2791 = vmatpush3.bf16.msra.mxu1 %v3071_v8 }
 0x6eb   : > { %2792 = vmatprep.subr.bf16.mxu1 %v3072_v24  ;;  %v4642_v24 = vrot.slane %v4638_v16, %v3781_v20 }
 0x6ee   : > { %2793 = vmatpush3.bf16.msra.mxu1 %v3073_v18 }
 0x6ef   : > { %2794 = vmatprep.subr.bf16.mxu1 %v3074_v11  ;;  %v4643_v11 = vrot.slane %v4640_v47, %v3779_v22 }
 0x6f2   : > { %2795 = vmatpush3.bf16.msra.mxu1 %v3075_v39 }
 0x6f3   : > { %2796 = vmatprep.subr.bf16.mxu1 %v3076_v15 }
 0x6f6   : > { %2797 = vmatpush3.bf16.msra.mxu1 %v3077_v37 }
 0x6f7   : > { %2798 = vmatprep.subr.bf16.mxu1 %v3078_v45 }
 0x6fa   : > { %2799 = vmatpush3.bf16.msra.mxu1 %v3079_v44 }
 0x6fb   : > { %2800 = vmatprep.subr.bf16.mxu1 %v3080_v53 }
 0x6fe   : > { %2801 = vmatpush3.bf16.msra.mxu1 %v3081_v55 }
 0x7b4   : > { %v2305_v14 = vpop.f32.mrb[16].mxu1 }
 0x7b5   : > { %v2319_v17 = vmul.f32 %v2305_v14, %v4621_v10  ;;  %v2329_v13 = vmul.f32 %v2305_v14, %v4623_v38  ;;  %v2307_v42 = vpop.f32.mrb[17].mxu1 }
 0x7b6   : > { %v2320_v49 = vmul.f32 %v2307_v42, %v4624_v50  ;;  %v2328_v7 = vmul.f32 %v2307_v42, %v4625_v36  ;;  %v2309_v32 = vpop.f32.mrb[18].mxu1 }
 0x7b7   : > { %v2321_v23 = vmul.f32 %v2309_v32, %v4627_v30  ;;  %v2331_v12 = vmul.f32 %v2309_v32, %v4629_v41  ;;  %v2311_v25 = vpop.f32.mrb[19].mxu1 }
 0x7b8   : > { %v2332_v35 = vadd.f32 %v2328_v7, %v2319_v17  ;;  %v2333_v43 = vadd.f32 %v2329_v13, %v2320_v49  ;;  %v2322_v27 = vmul.f32 %v2311_v25, %v4630_v4  ;;  %v2330_v19 = vmul.f32 %v2311_v25, %v4631_v54 }
 0x7ba   : > { %v2334_v31 = vadd.f32 %v2330_v19, %v2321_v23  ;;  %v2335_v21 = vadd.f32 %v2331_v12, %v2322_v27 }
 0x7bc   : > { %v2336_v40 = vpack.c.bf16 %v2334_v31, %v2332_v35  ;;  %v2337_v29 = vpack.c.bf16 %v2335_v21, %v2333_v43 }
 0x7be   : > { %2370 = vmatprep.mubr.bf16.mxu0 %v2337_v29 }
 0x7bf   : > { %2371 = vmatmul.mubr.bf16.vlgmr.msra.gmra.mrb[20].mxu0 %v2336_v40 }
 0x892   : > { %v2372_v56 = vpop.f32.mrb[20].mxu0 }
 0x893   : > { %v2386_v59 = vmul.f32 %v2372_v56, %v4633_v58  ;;  %v2396_v62 = vmul.f32 %v2372_v56, %v4635_v61  ;;  %v2374_v63 = vpop.f32.mrb[21].mxu0 }
 0x894   : > { %v2387_v0 = vmul.f32 %v2374_v63, %v4636_v28  ;;  %v2395_v2 = vmul.f32 %v2374_v63, %v4637_v1  ;;  %v2376_v3 = vpop.f32.mrb[22].mxu0 }
 0x895   : > { %v2388_v46 = vmul.f32 %v2376_v3, %v4639_v6  ;;  %v2398_v51 = vmul.f32 %v2376_v3, %v4641_v48  ;;  %v2378_v52 = vpop.f32.mrb[23].mxu0 }
 0x896   : > { %v2399_v33 = vadd.f32 %v2395_v2, %v2386_v59  ;;  %v2400_v8 = vadd.f32 %v2396_v62, %v2387_v0  ;;  %v2389_v18 = vmul.f32 %v2378_v52, %v4642_v24  ;;  %v2397_v39 = vmul.f32 %v2378_v52, %v4643_v11 }
 0x898   : > { %v2401_v15 = vadd.f32 %v2397_v39, %v2388_v46  ;;  %v2402_v14 = vadd.f32 %v2398_v51, %v2389_v18 }
 0x89a   : > { %v2403_v5 = vpack.c.bf16 %v2401_v15, %v2399_v33  ;;  %v2404_v10 = vpack.c.bf16 %v2402_v14, %v2400_v8 }
 0x89c   : > { %2565 = vmatprep.mubr.bf16.mxu1 %v2404_v10 }
 0x89d   : > { %2566 = vmatmul.mubr.bf16.vlgmr.msra.gmra.mrb[20].mxu1 %v2403_v5 }
 0x970   : > { %v2802_v17 = vpop.f32.mrb[20].mxu1 }
 0x971   : > { %v2803_v20 = vpop.f32.mrb[21].mxu1 }
 0x972   : > { %v2804_v22 = vadd.f32 %v2803_v20, %v2802_v17  ;;  %v2805_v34 = vpop.f32.mrb[22].mxu1 }
 0x973   : > { %v2806_v38 = vpop.f32.mrb[23].mxu1 }
 0x974   : > { %2575 = vst.msk [vmem:[%s328_s21] sm:$0xff] %vm2574_vm2, %v2804_v22  ;;  %v2807_v13 = vadd.f32 %v2806_v38, %v2805_v34 }
 0x976   : > { %2576 = vst.msk [vmem:[%s328_s21 + $0x8] sm:$0xff] %vm2574_vm2, %v2807_v13 }
 0x977 PF: > { %s4644_s27 = smov %s3404_s24  ;;  %p18_p6 = scmp.ge.s32.totalorder %s3404_s24, 4  }
 0x978   : > { %s4645_s24 = smov %s3238_s25  ;;  %s4646_s25 = smov %s3242_s26 }
 0x979   : > { %s4647_s26 = smov %s3413_s14  ;;  %20 = sbr.rel (!%p18_p6) target bundleno = 4 (0x4), region = 111 }
 0x980   :  { %2599 = vsyncpa [#allocation5], 1 }
 0x981   :  { %2601 = vsyncpa [#allocation5 + $0x1], 1 }
 0x982   :  { %2602 = vsyncpa [#allocation7], 1 }

</bundles_post_ra>
